<compile_context>
chip_gen: v6e
topology: v6e:2x2x1
jax: 0.10.0
libtpu: 0.0.40
codegen_flags: <defaults>
</compile_context>

<pallas_src>
from functools import partial

import jax
import jax.numpy as jnp
from jax.experimental import pallas as pl
from jax.experimental.pallas import tpu as pltpu

IN_CH = 5
HIDDEN_DIMS = [30, 30, 30, 30]
NUM_CLASSES = 3
NUM_LAYERS = len(HIDDEN_DIMS) + 1   # 4 hidden + head = 5
EMB_DIM = HIDDEN_DIMS[-1]

LANE = 128            # padded feature width of activations / weight slab
BIAS_ROW = LANE - 1   # row (weights) / lane (activations) carrying the biases / constant 1.0

_PREC = jax.lax.Precision.HIGHEST   # full-f32 matmul, matches the reference


def _round_up(n, m):
    return ((n + m - 1) // m) * m


def init_params(key, in_ch=IN_CH, hidden_dims=HIDDEN_DIMS, num_classes=NUM_CLASSES):
    """nn.Linear-style init (uniform +/- 1/sqrt(fan_in)); W stored as (in, out)."""
    dims = [in_ch] + list(hidden_dims) + [num_classes]
    params = []
    for fan_in, fan_out in zip(dims[:-1], dims[1:]):
        key, kw, kb = jax.random.split(key, 3)
        bound = 1.0 / (float(fan_in) ** 0.5)
        w = jax.random.uniform(kw, (fan_in, fan_out), jnp.float32, -bound, bound)
        b = jax.random.uniform(kb, (fan_out,), jnp.float32, -bound, bound)
        params.append((w, b))
    return params


def pack_params(params):
    """Pack all layers into one zero-padded (NUM_LAYERS, 128, 128) f32 slab.

    Layer k: W_k in rows [0, fan_in), bias b_k in row BIAS_ROW.
    Layers 0..3 also set W[k, BIAS_ROW, BIAS_ROW] = 1.0 so the constant
    "ones lane" (activation lane 127, which multiplies the bias row) is seeded
    by layer 0's explicit bias add and survives each matmul + ReLU.
    The head (layer 4) places its weights/bias in columns [0, NUM_CLASSES).
    """
    w = jnp.zeros((NUM_LAYERS, LANE, LANE), jnp.float32)
    for k, (wk, bk) in enumerate(params):
        din, dout = wk.shape
        w = w.at[k, :din, :dout].set(wk)
        w = w.at[k, BIAS_ROW, :dout].set(bk)
        if k < NUM_LAYERS - 1:          # propagate / seed the ones lane
            w = w.at[k, BIAS_ROW, BIAS_ROW].set(1.0)
    return w


def _mlp_kernel(x_ref, w_ref, emb_ref, logits_ref):
    # Layer 0: (TB, 5) @ (5, 128) + broadcast bias row.  The bias row also
    # seeds the constant ones lane (lane 127) used by the later layers.
    h = jnp.dot(x_ref[...], w_ref[0, :IN_CH, :],
                preferred_element_type=jnp.float32, precision=_PREC)
    h = jnp.maximum(h + w_ref[0, BIAS_ROW:BIAS_ROW + 1, :], 0.0)

    # Hidden layers 1..3: bias lives in row BIAS_ROW of the slab and the ones
    # lane is propagated via W[k, BIAS_ROW, BIAS_ROW] = 1, so each layer is a
    # single MXU dot + ReLU.
    for k in range(1, NUM_LAYERS - 1):
        h = jnp.dot(h, w_ref[k], preferred_element_type=jnp.float32,
                    precision=_PREC)
        h = jnp.maximum(h, 0.0)

    # Head (no ReLU): logits land in lanes [0, NUM_CLASSES).
    logits = jnp.dot(h, w_ref[NUM_LAYERS - 1],
                     preferred_element_type=jnp.float32, precision=_PREC)

    # Narrow writebacks: only the payload lanes go back to HBM.
    emb_ref[...] = h[:, :EMB_DIM].astype(emb_ref.dtype)
    logits_ref[...] = logits[:, :NUM_CLASSES].astype(logits_ref.dtype)


@partial(jax.jit, static_argnames=("block_b",))
def mlp_forward(x, w_slab, *, block_b=2048):
    """Returns (logits, emb) matching MLPModel.forward."""
    assert x.ndim == 2 and x.shape[1] == IN_CH
    B = x.shape[0]
    x = x.astype(jnp.float32)

    # Large batch tile to amortize the ~0.35 us per-grid-step overhead, capped
    # so the grid has >= 2 steps when B allows it (both v7x TCs get work).
    tb = max(8, min(_round_up(block_b, 8), _round_up((B + 1) // 2, 8)))
    nb = pl.cdiv(B, tb)
    b_pad = nb * tb
    if b_pad != B:
        x = jnp.pad(x, ((0, b_pad - B), (0, 0)))

    emb, logits = pl.pallas_call(
        _mlp_kernel,
        out_shape=(
            jax.ShapeDtypeStruct((b_pad, EMB_DIM), jnp.float32),
            jax.ShapeDtypeStruct((b_pad, NUM_CLASSES), jnp.float32),
        ),
        grid=(nb,),
        in_specs=[
            pl.BlockSpec((tb, IN_CH), lambda i: (i, 0)),                   # batch-tiled x
            pl.BlockSpec((NUM_LAYERS, LANE, LANE), lambda i: (0, 0, 0)),   # resident weight slab
        ],
        out_specs=(
            pl.BlockSpec((tb, EMB_DIM), lambda i: (i, 0)),                 # emb, 30 lanes
            pl.BlockSpec((tb, NUM_CLASSES), lambda i: (i, 0)),             # logits, 3 lanes
        ),
        compiler_params=pltpu.CompilerParams(
            dimension_semantics=("parallel",),
            vmem_limit_bytes=32 * 1024 * 1024,
        ),
    )(x, w_slab)

    if b_pad != B:
        emb = emb[:B]
        logits = logits[:B]
    return logits, emb


def mlp_reference(x, params):
    h = x.astype(jnp.float32)
    for w, b in params[:-1]:
        h = jnp.maximum(jnp.dot(h, w, precision=_PREC) + b, 0.0)
    wh, bh = params[-1]
    return jnp.dot(h, wh, precision=_PREC) + bh, h


if __name__ == "__main__":
    key = jax.random.PRNGKey(0)
    key, kx, kx2 = jax.random.split(key, 3)

    params = init_params(key)
    w_slab = pack_params(params)

    # Small batch (single grid step, no padding).
    B = 8
    x = jax.random.normal(kx, (B, IN_CH), jnp.float32)
    logits, emb = mlp_forward(x, w_slab)
    logits, emb = jax.block_until_ready((logits, emb))
    ref_logits, ref_emb = mlp_reference(x, params)
    assert logits.shape == (B, NUM_CLASSES)
    assert emb.shape == (B, EMB_DIM)
    assert jnp.allclose(logits, ref_logits, atol=1e-3, rtol=1e-3)
    assert jnp.allclose(emb, ref_emb, atol=1e-3, rtol=1e-3)

    # Larger ragged batch (exercises the 2-step batch grid, row padding and
    # the trim of the padded rows).
    B2 = 1000
    x2 = jax.random.normal(kx2, (B2, IN_CH), jnp.float32)
    logits2, emb2 = mlp_forward(x2, w_slab)
    logits2, emb2 = jax.block_until_ready((logits2, emb2))
    ref_logits2, ref_emb2 = mlp_reference(x2, params)
    assert logits2.shape == (B2, NUM_CLASSES)
    assert emb2.shape == (B2, EMB_DIM)
    assert jnp.allclose(logits2, ref_logits2, atol=1e-3, rtol=1e-3)
    assert jnp.allclose(emb2, ref_emb2, atol=1e-3, rtol=1e-3)

    print("KERNEL_OK")
</pallas_src>

<mosaic_0001>
module attributes {stable_mosaic.version = 11 : i64} {
  func.func @_mlp_kernel(%arg0: i32, %arg1: memref<8x5xf32, #tpu.memory_space<vmem>>, %arg2: memref<5x128x128xf32, #tpu.memory_space<vmem>>, %arg3: memref<8x30xf32, #tpu.memory_space<vmem>>, %arg4: memref<8x3xf32, #tpu.memory_space<vmem>>) attributes {dimension_semantics = [#tpu.dimension_semantics<parallel>], iteration_bounds = array<i64: 1>, scalar_prefetch = 0 : i64, scratch_operands = 0 : i64, tpu.core_type = #tpu.core_type<tc>, window_params = [{transform_indices = @transform_0, window_bounds = array<i64: 8, 5>}, {pipeline_mode = #tpu.pipeline_mode<synchronous>, transform_indices = @transform_1, window_bounds = array<i64: 5, 128, 128>}, {transform_indices = @transform_2, window_bounds = array<i64: 8, 30>}, {transform_indices = @transform_3, window_bounds = array<i64: 8, 3>}]} {
    %c0 = arith.constant 0 : index
    %c0_0 = arith.constant 0 : index
    %0 = vector.load %arg1[%c0, %c0_0] : memref<8x5xf32, #tpu.memory_space<vmem>>, vector<8x5xf32>
    %c0_1 = arith.constant 0 : index
    %c0_2 = arith.constant 0 : index
    %c0_3 = arith.constant 0 : index
    %1 = vector.load %arg2[%c0_1, %c0_2, %c0_3] : memref<5x128x128xf32, #tpu.memory_space<vmem>>, vector<1x5x128xf32>
    %2 = vector.shape_cast %1 : vector<1x5x128xf32> to vector<5x128xf32>
    %cst = arith.constant dense<0.000000e+00> : vector<8x128xf32>
    %3 = tpu.matmul %0, %2, %cst {dimension_numbers = #tpu.dot_dimension_numbers<[1], [0], [0], [1], [0, 0, 1, 1], [], []>, precision = #tpu.contract_precision<fp32>} : vector<8x5xf32>, vector<5x128xf32>, vector<8x128xf32> -> vector<8x128xf32>
    %c0_4 = arith.constant 0 : index
    %c127 = arith.constant 127 : index
    %c0_5 = arith.constant 0 : index
    %4 = vector.load %arg2[%c0_4, %c127, %c0_5] : memref<5x128x128xf32, #tpu.memory_space<vmem>>, vector<1x1x128xf32>
    %5 = vector.shape_cast %4 : vector<1x1x128xf32> to vector<1x128xf32>
    %6 = vector.broadcast %5 : vector<1x128xf32> to vector<8x128xf32>
    %7 = arith.addf %3, %6 : vector<8x128xf32>
    %cst_6 = arith.constant 0.000000e+00 : f32
    %8 = vector.broadcast %cst_6 : f32 to vector<8x128xf32>
    %9 = arith.maximumf %7, %8 : vector<8x128xf32>
    %c1 = arith.constant 1 : index
    %c0_7 = arith.constant 0 : index
    %c0_8 = arith.constant 0 : index
    %10 = vector.load %arg2[%c1, %c0_7, %c0_8] : memref<5x128x128xf32, #tpu.memory_space<vmem>>, vector<1x128x128xf32>
    %11 = vector.shape_cast %10 : vector<1x128x128xf32> to vector<128x128xf32>
    %cst_9 = arith.constant dense<0.000000e+00> : vector<8x128xf32>
    %12 = tpu.matmul %9, %11, %cst_9 {dimension_numbers = #tpu.dot_dimension_numbers<[1], [0], [0], [1], [0, 0, 1, 1], [], []>, precision = #tpu.contract_precision<fp32>} : vector<8x128xf32>, vector<128x128xf32>, vector<8x128xf32> -> vector<8x128xf32>
    %cst_10 = arith.constant 0.000000e+00 : f32
    %13 = vector.broadcast %cst_10 : f32 to vector<8x128xf32>
    %14 = arith.maximumf %12, %13 : vector<8x128xf32>
    %c2 = arith.constant 2 : index
    %c0_11 = arith.constant 0 : index
    %c0_12 = arith.constant 0 : index
    %15 = vector.load %arg2[%c2, %c0_11, %c0_12] : memref<5x128x128xf32, #tpu.memory_space<vmem>>, vector<1x128x128xf32>
    %16 = vector.shape_cast %15 : vector<1x128x128xf32> to vector<128x128xf32>
    %cst_13 = arith.constant dense<0.000000e+00> : vector<8x128xf32>
    %17 = tpu.matmul %14, %16, %cst_13 {dimension_numbers = #tpu.dot_dimension_numbers<[1], [0], [0], [1], [0, 0, 1, 1], [], []>, precision = #tpu.contract_precision<fp32>} : vector<8x128xf32>, vector<128x128xf32>, vector<8x128xf32> -> vector<8x128xf32>
    %cst_14 = arith.constant 0.000000e+00 : f32
    %18 = vector.broadcast %cst_14 : f32 to vector<8x128xf32>
    %19 = arith.maximumf %17, %18 : vector<8x128xf32>
    %c3 = arith.constant 3 : index
    %c0_15 = arith.constant 0 : index
    %c0_16 = arith.constant 0 : index
    %20 = vector.load %arg2[%c3, %c0_15, %c0_16] : memref<5x128x128xf32, #tpu.memory_space<vmem>>, vector<1x128x128xf32>
    %21 = vector.shape_cast %20 : vector<1x128x128xf32> to vector<128x128xf32>
    %cst_17 = arith.constant dense<0.000000e+00> : vector<8x128xf32>
    %22 = tpu.matmul %19, %21, %cst_17 {dimension_numbers = #tpu.dot_dimension_numbers<[1], [0], [0], [1], [0, 0, 1, 1], [], []>, precision = #tpu.contract_precision<fp32>} : vector<8x128xf32>, vector<128x128xf32>, vector<8x128xf32> -> vector<8x128xf32>
    %cst_18 = arith.constant 0.000000e+00 : f32
    %23 = vector.broadcast %cst_18 : f32 to vector<8x128xf32>
    %24 = arith.maximumf %22, %23 : vector<8x128xf32>
    %c4 = arith.constant 4 : index
    %c0_19 = arith.constant 0 : index
    %c0_20 = arith.constant 0 : index
    %25 = vector.load %arg2[%c4, %c0_19, %c0_20] : memref<5x128x128xf32, #tpu.memory_space<vmem>>, vector<1x128x128xf32>
    %26 = vector.shape_cast %25 : vector<1x128x128xf32> to vector<128x128xf32>
    %cst_21 = arith.constant dense<0.000000e+00> : vector<8x128xf32>
    %27 = tpu.matmul %24, %26, %cst_21 {dimension_numbers = #tpu.dot_dimension_numbers<[1], [0], [0], [1], [0, 0, 1, 1], [], []>, precision = #tpu.contract_precision<fp32>} : vector<8x128xf32>, vector<128x128xf32>, vector<8x128xf32> -> vector<8x128xf32>
    %28 = vector.extract_strided_slice %24 {offsets = [0, 0], sizes = [8, 30], strides = [1, 1]} : vector<8x128xf32> to vector<8x30xf32>
    %c0_22 = arith.constant 0 : index
    %c0_23 = arith.constant 0 : index
    %29 = vector.load %arg3[%c0_22, %c0_23] : memref<8x30xf32, #tpu.memory_space<vmem>>, vector<8x30xf32>
    tpu.vector_store %arg3[%c0_22, %c0_23], %28 {strides = array<i32>} : memref<8x30xf32, #tpu.memory_space<vmem>>, vector<8x30xf32>,
    %30 = vector.extract_strided_slice %27 {offsets = [0, 0], sizes = [8, 3], strides = [1, 1]} : vector<8x128xf32> to vector<8x3xf32>
    %c0_24 = arith.constant 0 : index
    %c0_25 = arith.constant 0 : index
    %31 = vector.load %arg4[%c0_24, %c0_25] : memref<8x3xf32, #tpu.memory_space<vmem>>, vector<8x3xf32>
    tpu.vector_store %arg4[%c0_24, %c0_25], %30 {strides = array<i32>} : memref<8x3xf32, #tpu.memory_space<vmem>>, vector<8x3xf32>,
    return
  }
  func.func @transform_0(%arg0: i32) -> (i32, i32) {
    %c0_i32 = arith.constant 0 : i32
    %c0_i32_0 = arith.constant 0 : i32
    return %arg0, %c0_i32 : i32, i32
  }
  func.func @transform_1(%arg0: i32) -> (i32, i32, i32) {
    %c0_i32 = arith.constant 0 : i32
    %c0_i32_0 = arith.constant 0 : i32
    %c0_i32_1 = arith.constant 0 : i32
    %c0_i32_2 = arith.constant 0 : i32
    return %c0_i32, %c0_i32_0, %c0_i32_1 : i32, i32, i32
  }
  func.func @transform_2(%arg0: i32) -> (i32, i32) {
    %c0_i32 = arith.constant 0 : i32
    %c0_i32_0 = arith.constant 0 : i32
    return %arg0, %c0_i32 : i32, i32
  }
  func.func @transform_3(%arg0: i32) -> (i32, i32) {
    %c0_i32 = arith.constant 0 : i32
    %c0_i32_0 = arith.constant 0 : i32
    return %arg0, %c0_i32 : i32, i32
  }
}

</mosaic_0001>

<bundles_post_ra>
// kernel: mlp_forward.1
= control target key start
LH: loop header
LB: loop body
LE: loop exit
PB: predicated region body
PF: predicated region fallthrough
CT: control target
= control target key end

     0   :  { %9 = vsyncpa [#allocation3], 0  ;;  %s6024_s0 = inlined_call_operand.hbm [shape: f32[8,5], index: 0, kind: input, shape index: {}]   ;;  %s6025_s1 = inlined_call_operand.hbm [shape: f32[5,128,128], index: 1, kind: input, shape index: {}]   ;;  %s6026_s2 = inlined_call_operand.hbm [shape: f32[8,30], index: 2, kind: output, shape index: {0}]   ;;  %s6027_s3 = inlined_call_operand.vmem [shape: f32[8,3], index: 3, kind: output, shape index: {1}]  }
   0x1   :  { %10 = vsyncpa [#allocation6], 0 }
   0x2   :  { %11 = vsyncpa [#allocation4], 0  ;;  %s4525_s12 = smov [#allocation2]   ;;  %s4526_s14 = smov [#allocation5]  }
   0x3   :  { %s18_s13 = sshll.u32 %s4525_s12, 4  ;;  %s27_s15 = sshll.u32 %s4526_s14, 4  ;;  %s19_s13 = int_to_ptr.vmem [resolvable:$true] %s18_s13  ;;  %s28_s15 = int_to_ptr.vmem [resolvable:$true] %s27_s15 }
   0x4   :  { %s4467_s16 = scalar_lea.vmem %s19_s13, 128  ;;  %p4472_p1 = scmp.lt.s32.totalorder %s19_s13, %s19_s13 }
   0x5   :  { %p4468_p0 = scmp.ne.s32.totalorder %s19_s13, %s4467_s16  ;;  %p4473_p2 = scmp.lt.s32.totalorder %s4467_s16, %s4467_s16 }
   0x7   :  { %p4474_p3 = por %p4473_p2, %p4472_p1 }
   0x9   :  { %p4475_p4 = pnand %p4474_p3, %p4468_p0 }
   0xb   :  { %4478 = shalt.err (!%p4475_p4)
}
   0xc   :  { %21 = dma.hbm_to_vmem [thread:$0]  %s6024_s0, 128, %s19_s13, [#allocation3]  }
   0xd   :  { %s4487_s19 = scalar_lea.vmem %s28_s15, 10240  ;;  %p4492_p6 = scmp.lt.s32.totalorder %s28_s15, %s28_s15 }
   0xe   :  { %p4488_p5 = scmp.ne.s32.totalorder %s28_s15, %s4487_s19  ;;  %p4493_p7 = scmp.lt.s32.totalorder %s4487_s19, %s4487_s19 }
  0x10   :  { %p4494_p8 = por %p4493_p7, %p4492_p6 }
  0x12   :  { %p4495_p9 = pnand %p4494_p8, %p4488_p5 }
  0x14   :  { %4498 = shalt.err (!%p4495_p9)
}
  0x15   :  { %s4527_s20 = smov 128   ;;  %s4528_s21 = smov 8  }
  0x16   :  { %33 = dma.hbm_to_vmem [thread:$0]  %s6025_s1, 10240, %s28_s15, [#allocation6], %s4527_s20, %s4527_s20, %s4528_s21  }
  0x17   :  { %4519 = dma.done.wait [#allocation3], 128  }
  0x18   :  { %4520 = vsyncadd [#allocation3], 4294967168 }
  0x19   :  { %4521 = dma.done.wait [#allocation6], 10240  }
  0x1a   :  { %4522 = vsyncadd [#allocation6], 4294957056  ;;  %v4529_v0 = vmov 0.0   ;;  %vm4530_vm0 = vmmov 0   ;;  %vm51_vm1 = vcmask 1044480   ;;  %vm47_vm2 = vcmask 39936  }
  0x1b   :  { %3582 = vmatprep.subr.mxu0 %v4529_v0  ;;  %3584 = vmatprep.mubr.msk.f32.mxu0 %vm4530_vm0, %v4529_v0  ;;  %v41_v1 = vld [vmem:[#allocation5] sm:$0x1f]  ;;  %v40_v2 = vld [vmem:[#allocation2] sm:$0xff]  ;;  %v517_v6 = vld [vmem:[#allocation5 + $0xf0] sm:$0xff]  ;;  %vm3137_vm3 = vcmask 244736   ;;  %s4531_s0 = smov [#allocation7]  }
  0x1c   :  { %3587 = vmatprep.subr.mxu1 %v4529_v0  ;;  %3589 = vmatprep.mubr.msk.f32.mxu1 %vm4530_vm0, %v4529_v0  ;;  %v518_v3 = vld [vmem:[#allocation5 + $0xf8] sm:$0xff]  ;;  %v53_v4 = vsel %vm51_vm1, %v41_v1, 0  ;;  %v49_v5 = vsel %vm47_vm2, %v40_v2, 0  ;;  %v516_v10 = vld [vmem:[#allocation5 + $0xe8] sm:$0xff]  ;;  %v4569_v13 = vand.u32 4294901760, %v517_v6  ;;  %v515_v14 = vld [vmem:[#allocation5 + $0xe0] sm:$0xff] }
  0x1d   :  { %v86_v7 = vand.u32 4294901760, %v53_v4  ;;  %v4564_v8 = vand.u32 4294901760, %v49_v5  ;;  %v4566_v9 = vand.u32 4294901760, %v518_v3  ;;  %v4575_v18 = vand.u32 4294901760, %v516_v10  ;;  %v514_v19 = vld [vmem:[#allocation5 + $0xd8] sm:$0xff]  ;;  %v513_v25 = vld [vmem:[#allocation5 + $0xd0] sm:$0xff] }
  0x1e   :  { %v4578_v22 = vsub.f32 %v517_v6, %v4569_v13  ;;  %v4580_v23 = vand.u32 4294901760, %v515_v14  ;;  %v4582_v24 = vand.u32 4294901760, %v514_v19  ;;  %v512_v30 = vld [vmem:[#allocation5 + $0xc8] sm:$0xff]  ;;  %v4592_v33 = vand.u32 4294901760, %v513_v25  ;;  %v511_v34 = vld [vmem:[#allocation5 + $0xc0] sm:$0xff]  ;;  %v510_v63 = vld [vmem:[#allocation5 + $0xb8] sm:$0xff] }
  0x1f   :  { %3583 = vmatpush3.msra.mxu0 %v86_v7  ;;  %v122_v11 = vsub.f32 %v49_v5, %v4564_v8  ;;  %v163_v12 = vsub.f32 %v53_v4, %v86_v7  ;;  %v4573_v17 = vsub.f32 %v518_v3, %v4566_v9  ;;  %v4586_v29 = vsub.f32 %v516_v10, %v4575_v18  ;;  %v509_v2 = vld [vmem:[#allocation5 + $0xb0] sm:$0xff]  ;;  %v508_v5 = vld [vmem:[#allocation5 + $0xa8] sm:$0xff]  ;;  %v507_v10 = vld [vmem:[#allocation5 + $0xa0] sm:$0xff]  ;;  %s3147_s1 = sshll.u32 %s4531_s0, 4  ;;  %s3148_s1 = int_to_ptr.vmem [resolvable:$true] %s3147_s1 }
  0x20   :  { %3592 = vmatprep.subr.mxu0 %v4529_v0  ;;  %v620_v31 = vand.u32 4294901760, %v4578_v22  ;;  %v4590_v32 = vsub.f32 %v515_v14, %v4580_v23  ;;  %v4603_v37 = vsub.f32 %v514_v19, %v4582_v24  ;;  %v4605_v38 = vand.u32 4294901760, %v512_v30  ;;  %s4499_s24 = scalar_lea.vmem %s3148_s1, 128  ;;  %p4504_p11 = scmp.lt.s32.totalorder %s3148_s1, %s3148_s1 }
  0x21   :  { %v123_v15 = vand.u32 4294901760, %v122_v11  ;;  %v164_v16 = vand.u32 4294901760, %v163_v12  ;;  %v613_v28 = vand.u32 4294901760, %v4573_v17  ;;  %v627_v36 = vand.u32 4294901760, %v4586_v29  ;;  %p4500_p10 = scmp.ne.s32.totalorder %s3148_s1, %s4499_s24  ;;  %p4505_p12 = scmp.lt.s32.totalorder %s4499_s24, %s4499_s24 }
  0x22   :  { %v621_v39 = vsub.f32 %v4578_v22, %v620_v31  ;;  %v634_v40 = vand.u32 4294901760, %v4590_v32  ;;  %v4615_v41 = vsub.f32 %v513_v25, %v4592_v33  ;;  %v4617_v42 = vand.u32 4294901760, %v511_v34 }
  0x23   :  { %v124_v20 = vsub.f32 %v122_v11, %v123_v15  ;;  %v165_v21 = vsub.f32 %v163_v12, %v164_v16  ;;  %v614_v35 = vsub.f32 %v4573_v17, %v613_v28  ;;  %v628_v44 = vsub.f32 %v4586_v29, %v627_v36  ;;  %p4506_p13 = por %p4505_p12, %p4504_p11 }
  0x24   :  { %v641_v45 = vand.u32 4294901760, %v4603_v37  ;;  %v4627_v46 = vsub.f32 %v512_v30, %v4605_v38  ;;  %v622_v47 = vand.u32 4294901760, %v621_v39  ;;  %v635_v48 = vsub.f32 %v4590_v32, %v634_v40 }
  0x25   :  { %v125_v26 = vand.u32 4294901760, %v124_v20  ;;  %v166_v27 = vand.u32 4294901760, %v165_v21  ;;  %v615_v43 = vand.u32 4294901760, %v614_v35  ;;  %v648_v49 = vand.u32 4294901760, %v4615_v41  ;;  %p4507_p0 = pnand %p4506_p13, %p4500_p10 }
  0x26   :  { %v4638_v50 = vsub.f32 %v511_v34, %v4617_v42  ;;  %v629_v51 = vand.u32 4294901760, %v628_v44  ;;  %v642_v52 = vsub.f32 %v4603_v37, %v641_v45  ;;  %v655_v53 = vand.u32 4294901760, %v4627_v46  ;;  %v504_v44 = vld [vmem:[#allocation5 + $0x88] sm:$0xff] }
  0x27   :  { %3585 = vmatmul.mubr.f32.vlgmr.msra.gmra.mxu0 %v125_v26  ;;  %3588 = vmatpush3.msra.mxu1 %v166_v27  ;;  %v636_v54 = vand.u32 4294901760, %v635_v48  ;;  %v649_v55 = vsub.f32 %v4615_v41, %v648_v49  ;;  %v4684_v1 = vand.u32 4294901760, %v510_v63  ;;  %v4689_v4 = vand.u32 4294901760, %v509_v2  ;;  %v505_v27 = vld [vmem:[#allocation5 + $0x90] sm:$0xff] }
  0x28   :  { %3593 = vmatpush3.msra.mxu0 %v163_v12  ;;  %3590 = vmatmul.mubr.f32.vlgmr.msra.gmra.mxu1 %v4564_v8  ;;  %v662_v56 = vand.u32 4294901760, %v4638_v50  ;;  %v643_v57 = vand.u32 4294901760, %v642_v52  ;;  %v656_v58 = vsub.f32 %v4627_v46, %v655_v53  ;;  %v4727_v39 = vand.u32 4294901760, %v505_v27 }
  0x29   :  { %3597 = vmatprep.subr.mxu1 %v4529_v0  ;;  %3594 = vmatprep.mubr.msk.f32.mxu0 %vm4530_vm0, %v4529_v0  ;;  %v650_v59 = vand.u32 4294901760, %v649_v55  ;;  %v4687_v3 = vsub.f32 %v510_v63, %v4684_v1  ;;  %v4740_v52 = vand.u32 4294901760, %v504_v44  ;;  %v503_v55 = vld [vmem:[#allocation5 + $0x80] sm:$0xff] }
  0x2a   :  { %3598 = vmatpush3.msra.mxu1 %v86_v7  ;;  %3602 = vmatprep.subr.mxu0 %v4529_v0  ;;  %v663_v60 = vsub.f32 %v4638_v50, %v662_v56  ;;  %v657_v61 = vand.u32 4294901760, %v656_v58 }
  0x2b   :  { %3595 = vmatmul.mubr.f32.vlgmr.msra.gmra.mxu0 %v122_v11  ;;  %3599 = vmatprep.mubr.msk.f32.mxu1 %vm4530_vm0, %v4529_v0  ;;  %v669_v6 = vand.u32 4294901760, %v4687_v3 }
  0x2c   :  { %3603 = vmatpush3.msra.mxu0 %v164_v16  ;;  %3600 = vmatmul.mubr.f32.vlgmr.msra.gmra.mxu1 %v123_v15  ;;  %v664_v62 = vand.u32 4294901760, %v663_v60  ;;  %v4708_v15 = vand.u32 4294901760, %v507_v10  ;;  %v506_v16 = vld [vmem:[#allocation5 + $0x98] sm:$0xff]  ;;  %v4750_v60 = vand.u32 4294901760, %v503_v55 }
  0x2d   :  { %3607 = vmatprep.subr.mxu1 %v4529_v0  ;;  %3604 = vmatprep.mubr.msk.f32.mxu0 %vm4530_vm0, %v4529_v0  ;;  %v670_v11 = vsub.f32 %v4687_v3, %v669_v6  ;;  %v4720_v26 = vand.u32 4294901760, %v506_v16 }
  0x2e   :  { %3608 = vmatpush3.msra.mxu1 %v86_v7  ;;  %3609 = vmatprep.mubr.msk.f32.mxu1 %vm4530_vm0, %v4529_v0  ;;  %v4695_v7 = vsub.f32 %v509_v2, %v4689_v4  ;;  %v4717_v25 = vsub.f32 %v507_v10, %v4708_v15  ;;  %v4763_v2 = vsub.f32 %v503_v55, %v4750_v60 }
  0x2f   :  { %3605 = vmatmul.mubr.f32.vlgmr.msra.gmra.mxu0 %v4564_v8  ;;  %3647 = vmatprep.subr.mxu1 %v4529_v0  ;;  %v671_v19 = vand.u32 4294901760, %v670_v11 }
  0x30   :  { %3610 = vmatmul.mubr.f32.vlgmr.msra.gmra.mxu1 %v4564_v8  ;;  %3612 = vmatprep.subr.mxu0 %v4529_v0  ;;  %v4697_v8 = vand.u32 4294901760, %v508_v5  ;;  %v676_v12 = vand.u32 4294901760, %v4695_v7  ;;  %v6032_v35 = vand.u32 4294901760, %v4717_v25 }
  0x31   :  { %3648 = vmatpush3.msra.mxu1 %v615_v43  ;;  %3613 = vmatpush3.msra.mxu0 %v4566_v9  ;;  %v4731_v43 = vsub.f32 %v506_v16, %v4720_v26  ;;  %v6028_v16 = vand.u32 4294901760, %v4763_v2 }
  0x32   :  { %3649 = vmatprep.subr.mxu1 %v4529_v0  ;;  %3614 = vmatprep.subr.mxu0 %v4529_v0  ;;  %v4706_v14 = vsub.f32 %v508_v5, %v4697_v8  ;;  %v677_v20 = vsub.f32 %v4695_v7, %v676_v12  ;;  %v691_v48 = vsub.f32 %v4717_v25, %v6032_v35 }
  0x33   :  { %3650 = vmatpush3.msra.mxu1 %v622_v47  ;;  %3615 = vmatpush3.msra.mxu0 %v4569_v13 }
  0x34   :  { %3651 = vmatprep.subr.mxu1 %v4529_v0  ;;  %3616 = vmatprep.subr.mxu0 %v4529_v0  ;;  %v6033_v21 = vand.u32 4294901760, %v4706_v14  ;;  %v678_v30 = vand.u32 4294901760, %v677_v20  ;;  %v719_v20 = vsub.f32 %v4763_v2, %v6028_v16 }
  0x35   :  { %3652 = vmatpush3.msra.mxu1 %v629_v51  ;;  %3617 = vmatpush3.msra.mxu0 %v4575_v18  ;;  %v4738_v51 = vsub.f32 %v505_v27, %v4727_v39 }
  0x36   :  { %3653 = vmatprep.subr.mxu1 %v4529_v0  ;;  %3618 = vmatprep.subr.mxu0 %v4529_v0  ;;  %v684_v34 = vsub.f32 %v4706_v14, %v6033_v21  ;;  %v720_v27 = vand.u32 4294901760, %v719_v20 }
  0x37   :  { %3654 = vmatpush3.msra.mxu1 %v636_v54  ;;  %3619 = vmatpush3.msra.mxu0 %v4580_v23  ;;  %v6031_v54 = vand.u32 4294901760, %v4731_v43  ;;  %v6030_v58 = vand.u32 4294901760, %v4738_v51 }
  0x38   :  { %3655 = vmatprep.subr.mxu1 %v4529_v0  ;;  %3620 = vmatprep.subr.mxu0 %v4529_v0  ;;  %v685_v47 = vand.u32 4294901760, %v684_v34 }
  0x39   :  { %3656 = vmatpush3.msra.mxu1 %v643_v57  ;;  %3621 = vmatpush3.msra.mxu0 %v4582_v24  ;;  %v692_v57 = vand.u32 4294901760, %v691_v48 }
  0x3a   :  { %3657 = vmatprep.subr.mxu1 %v4529_v0  ;;  %3622 = vmatprep.subr.mxu0 %v4529_v0 }
  0x3b   :  { %3658 = vmatpush3.msra.mxu1 %v650_v59  ;;  %3623 = vmatpush3.msra.mxu0 %v4592_v33  ;;  %v4748_v59 = vsub.f32 %v504_v44, %v4740_v52 }
  0x3c   :  { %3659 = vmatprep.subr.mxu1 %v4529_v0  ;;  %3624 = vmatprep.subr.mxu0 %v4529_v0 }
  0x3d   :  { %3660 = vmatpush3.msra.mxu1 %v657_v61  ;;  %3625 = vmatpush3.msra.mxu0 %v4605_v38  ;;  %v698_v61 = vsub.f32 %v4731_v43, %v6031_v54  ;;  %v6029_v63 = vand.u32 4294901760, %v4748_v59 }
  0x3e   :  { %3661 = vmatprep.subr.mxu1 %v4529_v0  ;;  %3626 = vmatprep.subr.mxu0 %v4529_v0 }
  0x3f   :  { %3662 = vmatpush3.msra.mxu1 %v664_v62  ;;  %3627 = vmatpush3.msra.mxu0 %v4617_v42  ;;  %v705_v62 = vsub.f32 %v4738_v51, %v6030_v58  ;;  %v699_v5 = vand.u32 4294901760, %v698_v61  ;;  %v712_v11 = vsub.f32 %v4748_v59, %v6029_v63 }
  0x40   :  { %3663 = vmatprep.subr.mxu1 %v4529_v0  ;;  %3628 = vmatprep.subr.mxu0 %v4529_v0 }
  0x41   :  { %3679 = vmatprep.mubr.msk.f32.mxu1 %vm4530_vm0, %v4529_v0  ;;  %3644 = vmatprep.mubr.msk.f32.mxu0 %vm4530_vm0, %v4529_v0  ;;  %v706_v10 = vand.u32 4294901760, %v705_v62 }
  0x42   :  { %3629 = vmatpush3.msra.mxu0 %v4684_v1  ;;  %3664 = vmatpush3.msra.mxu1 %v671_v19  ;;  %v713_v19 = vand.u32 4294901760, %v712_v11 }
  0x43   :  { %3630 = vmatprep.subr.mxu0 %v4529_v0  ;;  %3665 = vmatprep.subr.mxu1 %v4529_v0 }
  0x44   :  { %3631 = vmatpush3.msra.mxu0 %v4689_v4  ;;  %3666 = vmatpush3.msra.mxu1 %v678_v30  ;;  %v3161_v30 = vld [vmem:[#allocation5 + $0x7f] ss:$0 sm:$0xff] }
  0x45   :  { %3632 = vmatprep.subr.mxu0 %v4529_v0  ;;  %3667 = vmatprep.subr.mxu1 %v4529_v0 }
  0x46   :  { %3633 = vmatpush3.msra.mxu0 %v4697_v8  ;;  %3668 = vmatpush3.msra.mxu1 %v685_v47 }
  0x47   :  { %3634 = vmatprep.subr.mxu0 %v4529_v0  ;;  %3669 = vmatprep.subr.mxu1 %v4529_v0 }
  0x48   :  { %3635 = vmatpush3.msra.mxu0 %v4708_v15  ;;  %3670 = vmatpush3.msra.mxu1 %v692_v57 }
  0x49   :  { %3636 = vmatprep.subr.mxu0 %v4529_v0  ;;  %3671 = vmatprep.subr.mxu1 %v4529_v0 }
  0x4a   :  { %3637 = vmatpush3.msra.mxu0 %v4720_v26  ;;  %3672 = vmatpush3.msra.mxu1 %v699_v5 }
  0x4b   :  { %3638 = vmatprep.subr.mxu0 %v4529_v0  ;;  %3673 = vmatprep.subr.mxu1 %v4529_v0 }
  0x4c   :  { %3639 = vmatpush3.msra.mxu0 %v4727_v39  ;;  %3674 = vmatpush3.msra.mxu1 %v706_v10 }
  0x4d   :  { %3640 = vmatprep.subr.mxu0 %v4529_v0  ;;  %3675 = vmatprep.subr.mxu1 %v4529_v0 }
  0x4e   :  { %3641 = vmatpush3.msra.mxu0 %v4740_v52  ;;  %3676 = vmatpush3.msra.mxu1 %v713_v19 }
  0x4f   :  { %3642 = vmatprep.subr.mxu0 %v4529_v0  ;;  %3677 = vmatprep.subr.mxu1 %v4529_v0 }
  0x50   :  { %3643 = vmatpush3.msra.mxu0 %v4750_v60  ;;  %3678 = vmatpush3.msra.mxu1 %v720_v27 }
  0x51   :  { %3682 = vmatprep.subr.mxu0 %v4529_v0  ;;  %3717 = vmatprep.subr.mxu1 %v4529_v0 }
  0xe7   :  { %v127_v34 = vpop.f32.mrf.mxu0 }
  0xe8   :  { %v128_v44 = vadd.f32 %v3161_v30, %v127_v34  ;;  %v203_v47 = vpop.f32.mrf.mxu1 }
  0xe9   :  { %v3586_v48 = vpop.f32.mrf.mxu0 }
  0xea   :  { %v204_v55 = vadd.f32 %v203_v47, %v128_v44  ;;  %v3591_v57 = vpop.f32.mrf.mxu1 }
  0xeb   :  { %v277_v61 = vpop.f32.mrf.mxu0  ;;  %v1169_v57 = vld [vmem:[#allocation5 + $0x138] sm:$0xff] }
  0xec   :  { %v278_v62 = vadd.f32 %v277_v61, %v204_v55  ;;  %v351_v5 = vpop.f32.mrf.mxu1 }
  0xed   :  { %v3596_v10 = vpop.f32.mrf.mxu0 }
  0xee   :  { %v352_v11 = vadd.f32 %v351_v5, %v278_v62  ;;  %v3601_v16 = vpop.f32.mrf.mxu1  ;;  %v5036_v5 = vand.u32 4294901760, %v1169_v57  ;;  %v1168_v10 = vld [vmem:[#allocation5 + $0x130] sm:$0xff] }
  0xef   :  { %v425_v20 = vpop.f32.mrf.mxu0 }
  0xf0   :  { %v426_v19 = vadd.f32 %v425_v20, %v352_v11  ;;  %v497_v63 = vpop.f32.mrf.mxu1  ;;  %v5042_v20 = vsub.f32 %v1169_v57, %v5036_v5 }
  0xf1   :  { %v3606_v58 = vpop.f32.mrf.mxu0 }
  0xf2   :  { %v498_v27 = vadd.f32 %v497_v63, %v426_v19  ;;  %v3611_v54 = vpop.f32.mrf.mxu1  ;;  %v5044_v19 = vand.u32 4294901760, %v1168_v10 }
  0xf4   :  { %v501_v35 = vmax.f32 %v498_v27, 0.0  ;;  %v1167_v27 = vld [vmem:[#allocation5 + $0x128] sm:$0xff] }
  0xf6   :  { %v4780_v21 = vand.u32 4294901760, %v501_v35 }
  0xf8   :  { %v4783_v30 = vsub.f32 %v501_v35, %v4780_v21  ;;  %3680 = vmatmul.mubr.f32.vlgmr.msra.gmra.mxu1 %v4780_v21 }
  0xf9   :  { %3718 = vmatpush3.msra.mxu1 %v4566_v9  ;;  %3749 = vmatprep.mubr.msk.f32.mxu1 %vm4530_vm0, %v4529_v0 }
  0xfa   :  { %v602_v16 = vand.u32 4294901760, %v4783_v30  ;;  %3719 = vmatprep.subr.mxu1 %v4529_v0 }
  0xfb   :  { %3720 = vmatpush3.msra.mxu1 %v4569_v13 }
  0xfc   :  { %v603_v54 = vsub.f32 %v4783_v30, %v602_v16  ;;  %3721 = vmatprep.subr.mxu1 %v4529_v0 }
  0xfd   :  { %3722 = vmatpush3.msra.mxu1 %v4575_v18 }
  0xfe   :  { %3723 = vmatprep.subr.mxu1 %v4529_v0  ;;  %v604_v35 = vand.u32 4294901760, %v603_v54  ;;  %v5051_v54 = vsub.f32 %v1168_v10, %v5044_v19 }
  0xff   :  { %3724 = vmatpush3.msra.mxu1 %v4580_v23 }
 0x100   :  { %3725 = vmatprep.subr.mxu1 %v4529_v0  ;;  %3645 = vmatmul.mubr.f32.vlgmr.msra.gmra.mxu0 %v604_v35  ;;  %v5053_v35 = vand.u32 4294901760, %v1167_v27 }
 0x101   :  { %3683 = vmatpush3.msra.mxu0 %v4573_v17  ;;  %3726 = vmatpush3.msra.mxu1 %v4582_v24  ;;  %v6048_v17 = vand.u32 4294901760, %v4731_v43 }
 0x102   :  { %3684 = vmatprep.subr.mxu0 %v4529_v0  ;;  %3727 = vmatprep.subr.mxu1 %v4529_v0 }
 0x103   :  { %3685 = vmatpush3.msra.mxu0 %v4578_v22  ;;  %3728 = vmatpush3.msra.mxu1 %v4592_v33  ;;  %v6050_v22 = vand.u32 4294901760, %v4748_v59 }
 0x104   :  { %3686 = vmatprep.subr.mxu0 %v4529_v0  ;;  %3729 = vmatprep.subr.mxu1 %v4529_v0 }
 0x105   :  { %3687 = vmatpush3.msra.mxu0 %v4586_v29  ;;  %3730 = vmatpush3.msra.mxu1 %v4605_v38  ;;  %v1176_v29 = vld [vmem:[#allocation5 + $0x170] sm:$0xff] }
 0x106   :  { %3688 = vmatprep.subr.mxu0 %v4529_v0  ;;  %3731 = vmatprep.subr.mxu1 %v4529_v0 }
 0x107   :  { %3689 = vmatpush3.msra.mxu0 %v4590_v32  ;;  %3732 = vmatpush3.msra.mxu1 %v4617_v42  ;;  %v4952_v32 = vand.u32 4294901760, %v1176_v29 }
 0x108   :  { %3690 = vmatprep.subr.mxu0 %v4529_v0  ;;  %3733 = vmatprep.subr.mxu1 %v4529_v0 }
 0x109   :  { %3691 = vmatpush3.msra.mxu0 %v4603_v37  ;;  %3734 = vmatpush3.msra.mxu1 %v4684_v1  ;;  %v1173_v37 = vld [vmem:[#allocation5 + $0x158] sm:$0xff] }
 0x10a   :  { %3692 = vmatprep.subr.mxu0 %v4529_v0  ;;  %3735 = vmatprep.subr.mxu1 %v4529_v0 }
 0x10b   :  { %3693 = vmatpush3.msra.mxu0 %v4615_v41  ;;  %3736 = vmatpush3.msra.mxu1 %v4689_v4  ;;  %v4959_v41 = vand.u32 4294901760, %v1173_v37 }
 0x10c   :  { %3694 = vmatprep.subr.mxu0 %v4529_v0  ;;  %3737 = vmatprep.subr.mxu1 %v4529_v0 }
 0x10d   :  { %3695 = vmatpush3.msra.mxu0 %v4627_v46  ;;  %3738 = vmatpush3.msra.mxu1 %v4697_v8  ;;  %v1170_v46 = vld [vmem:[#allocation5 + $0x140] sm:$0xff] }
 0x10e   :  { %3696 = vmatprep.subr.mxu0 %v4529_v0  ;;  %3739 = vmatprep.subr.mxu1 %v4529_v0 }
 0x10f   :  { %3697 = vmatpush3.msra.mxu0 %v4638_v50  ;;  %3740 = vmatpush3.msra.mxu1 %v4708_v15  ;;  %v4964_v50 = vsub.f32 %v1176_v29, %v4952_v32 }
 0x110   :  { %3698 = vmatprep.subr.mxu0 %v4529_v0  ;;  %3741 = vmatprep.subr.mxu1 %v4529_v0 }
 0x111   :  { %3699 = vmatpush3.msra.mxu0 %v4687_v3  ;;  %3742 = vmatpush3.msra.mxu1 %v4720_v26 }
 0x112   :  { %3700 = vmatprep.subr.mxu0 %v4529_v0  ;;  %3743 = vmatprep.subr.mxu1 %v4529_v0 }
 0x113   :  { %3701 = vmatpush3.msra.mxu0 %v4695_v7  ;;  %3744 = vmatpush3.msra.mxu1 %v4727_v39 }
 0x114   :  { %3702 = vmatprep.subr.mxu0 %v4529_v0  ;;  %3745 = vmatprep.subr.mxu1 %v4529_v0 }
 0x115   :  { %3703 = vmatpush3.msra.mxu0 %v4706_v14  ;;  %3746 = vmatpush3.msra.mxu1 %v4740_v52 }
 0x116   :  { %3704 = vmatprep.subr.mxu0 %v4529_v0  ;;  %3747 = vmatprep.subr.mxu1 %v4529_v0 }
 0x117   :  { %3705 = vmatpush3.msra.mxu0 %v4717_v25  ;;  %3748 = vmatpush3.msra.mxu1 %v4750_v60 }
 0x118   :  { %3706 = vmatprep.subr.mxu0 %v4529_v0  ;;  %3750 = vmatmul.mubr.f32.vlgmr.msra.gmra.mxu1 %v602_v16  ;;  %v1328_v16 = vand.u32 4294901760, %v5042_v20 }
 0x119   :  { %3787 = vmatprep.subr.mxu1 %v4529_v0  ;;  %3707 = vmatpush3.msra.mxu0 %v4731_v43 }
 0x11a   :  { %3788 = vmatpush3.msra.mxu1 %v4566_v9  ;;  %3708 = vmatprep.subr.mxu0 %v4529_v0  ;;  %v6046_v9 = vand.u32 4294901760, %v4706_v14 }
 0x11b   :  { %3789 = vmatprep.subr.mxu1 %v4529_v0  ;;  %3709 = vmatpush3.msra.mxu0 %v4738_v51 }
 0x11c   :  { %3790 = vmatpush3.msra.mxu1 %v4569_v13  ;;  %3710 = vmatprep.subr.mxu0 %v4529_v0  ;;  %v6047_v13 = vand.u32 4294901760, %v4717_v25 }
 0x11d   :  { %3791 = vmatprep.subr.mxu1 %v4529_v0  ;;  %3711 = vmatpush3.msra.mxu0 %v4748_v59 }
 0x11e   :  { %3792 = vmatpush3.msra.mxu1 %v4575_v18  ;;  %3712 = vmatprep.subr.mxu0 %v4529_v0  ;;  %v6049_v18 = vand.u32 4294901760, %v4738_v51 }
 0x11f   :  { %3793 = vmatprep.subr.mxu1 %v4529_v0  ;;  %3713 = vmatpush3.msra.mxu0 %v4763_v2 }
 0x120   :  { %3714 = vmatprep.mubr.msk.f32.mxu0 %vm4530_vm0, %v4529_v0  ;;  %3794 = vmatpush3.msra.mxu1 %v4580_v23  ;;  %v6051_v23 = vand.u32 4294901760, %v4763_v2 }
 0x121   :  { %3715 = vmatmul.mubr.f32.vlgmr.msra.gmra.mxu0 %v4783_v30  ;;  %3752 = vmatprep.subr.mxu0 %v4529_v0 }
 0x122   :  { %3795 = vmatprep.subr.mxu1 %v4529_v0  ;;  %3753 = vmatpush3.msra.mxu0 %v613_v28 }
 0x123   :  { %3796 = vmatpush3.msra.mxu1 %v4582_v24  ;;  %3754 = vmatprep.subr.mxu0 %v4529_v0  ;;  %v1177_v24 = vld [vmem:[#allocation5 + $0x178] sm:$0xff] }
 0x124   :  { %3797 = vmatprep.subr.mxu1 %v4529_v0  ;;  %3755 = vmatpush3.msra.mxu0 %v620_v31  ;;  %v4947_v28 = vand.u32 4294901760, %v1177_v24 }
 0x125   :  { %3798 = vmatpush3.msra.mxu1 %v4592_v33  ;;  %3756 = vmatprep.subr.mxu0 %v4529_v0  ;;  %v1175_v33 = vld [vmem:[#allocation5 + $0x168] sm:$0xff] }
 0x126   :  { %3799 = vmatprep.subr.mxu1 %v4529_v0  ;;  %3757 = vmatpush3.msra.mxu0 %v627_v36  ;;  %v4950_v31 = vsub.f32 %v1177_v24, %v4947_v28  ;;  %v1174_v36 = vld [vmem:[#allocation5 + $0x160] sm:$0xff] }
 0x127   :  { %3800 = vmatpush3.msra.mxu1 %v4605_v38  ;;  %3758 = vmatprep.subr.mxu0 %v4529_v0  ;;  %v4955_v38 = vand.u32 4294901760, %v1175_v33 }
 0x128   :  { %3801 = vmatprep.subr.mxu1 %v4529_v0  ;;  %3759 = vmatpush3.msra.mxu0 %v634_v40  ;;  %v4957_v40 = vand.u32 4294901760, %v1174_v36 }
 0x129   :  { %3802 = vmatpush3.msra.mxu1 %v4617_v42  ;;  %3760 = vmatprep.subr.mxu0 %v4529_v0  ;;  %v1172_v42 = vld [vmem:[#allocation5 + $0x150] sm:$0xff] }
 0x12a   :  { %3803 = vmatprep.subr.mxu1 %v4529_v0  ;;  %3761 = vmatpush3.msra.mxu0 %v641_v45  ;;  %v1171_v45 = vld [vmem:[#allocation5 + $0x148] sm:$0xff]  ;;  %v4975_v3 = vsub.f32 %v1174_v36, %v4957_v40 }
 0x12b   :  { %3804 = vmatpush3.msra.mxu1 %v4684_v1  ;;  %3762 = vmatprep.subr.mxu0 %v4529_v0  ;;  %v4972_v1 = vsub.f32 %v1175_v33, %v4955_v38 }
 0x12c   :  { %3805 = vmatprep.subr.mxu1 %v4529_v0  ;;  %3763 = vmatpush3.msra.mxu0 %v648_v49  ;;  %v1272_v49 = vand.u32 4294901760, %v4950_v31 }
 0x12d   :  { %3806 = vmatpush3.msra.mxu1 %v4689_v4  ;;  %3764 = vmatprep.subr.mxu0 %v4529_v0  ;;  %v4978_v4 = vsub.f32 %v1173_v37, %v4959_v41 }
 0x12e   :  { %3807 = vmatprep.subr.mxu1 %v4529_v0  ;;  %3765 = vmatpush3.msra.mxu0 %v655_v53  ;;  %v4967_v53 = vand.u32 4294901760, %v1172_v42  ;;  %v1273_v7 = vsub.f32 %v4950_v31, %v1272_v49 }
 0x12f   :  { %3808 = vmatpush3.msra.mxu1 %v4697_v8  ;;  %3766 = vmatprep.subr.mxu0 %v4529_v0  ;;  %v1279_v8 = vand.u32 4294901760, %v4964_v50  ;;  %v1300_v25 = vand.u32 4294901760, %v4978_v4 }
 0x130   :  { %3809 = vmatprep.subr.mxu1 %v4529_v0  ;;  %3767 = vmatpush3.msra.mxu0 %v662_v56  ;;  %v4969_v56 = vand.u32 4294901760, %v1171_v45 }
 0x131   :  { %3810 = vmatpush3.msra.mxu1 %v4708_v15  ;;  %3768 = vmatprep.subr.mxu0 %v4529_v0  ;;  %v1286_v15 = vand.u32 4294901760, %v4972_v1 }
 0x132   :  { %3811 = vmatprep.subr.mxu1 %v4529_v0  ;;  %3769 = vmatpush3.msra.mxu0 %v669_v6  ;;  %v4981_v6 = vand.u32 4294901760, %v1170_v46  ;;  %v4992_v14 = vsub.f32 %v1171_v45, %v4969_v56 }
 0x133   :  { %3812 = vmatpush3.msra.mxu1 %v4720_v26  ;;  %3770 = vmatprep.subr.mxu0 %v4529_v0  ;;  %v1274_v26 = vand.u32 4294901760, %v1273_v7 }
 0x134   :  { %3813 = vmatprep.subr.mxu1 %v4529_v0  ;;  %3771 = vmatpush3.msra.mxu0 %v676_v12  ;;  %v4988_v12 = vsub.f32 %v1172_v42, %v4967_v53  ;;  %v5004_v51 = vsub.f32 %v1170_v46, %v4981_v6  ;;  %v1314_v63 = vand.u32 4294901760, %v4992_v14  ;;  %v1164_v42 = vld [vmem:[#allocation5 + $0x110] sm:$0xff] }
 0x135   :  { %3814 = vmatpush3.msra.mxu1 %v4727_v39  ;;  %3772 = vmatprep.subr.mxu0 %v4529_v0  ;;  %v1280_v39 = vsub.f32 %v4964_v50, %v1279_v8 }
 0x136   :  { %3815 = vmatprep.subr.mxu1 %v4529_v0  ;;  %3773 = vmatpush3.msra.mxu0 %v6046_v9  ;;  %v1307_v43 = vand.u32 4294901760, %v4988_v12  ;;  %v1321_v47 = vand.u32 4294901760, %v5004_v51  ;;  %v1315_v55 = vsub.f32 %v4992_v14, %v1314_v63  ;;  %v1166_v9 = vld [vmem:[#allocation5 + $0x120] sm:$0xff] }
 0x137   :  { %3816 = vmatpush3.msra.mxu1 %v4740_v52  ;;  %3774 = vmatprep.subr.mxu0 %v4529_v0  ;;  %v1287_v52 = vsub.f32 %v4972_v1, %v1286_v15  ;;  %v1281_v59 = vand.u32 4294901760, %v1280_v39 }
 0x138   :  { %3817 = vmatprep.subr.mxu1 %v4529_v0  ;;  %3775 = vmatpush3.msra.mxu0 %v6047_v13  ;;  %v1308_v44 = vsub.f32 %v4988_v12, %v1307_v43  ;;  %v1322_v62 = vsub.f32 %v5004_v51, %v1321_v47  ;;  %v1316_v11 = vand.u32 4294901760, %v1315_v55  ;;  %v1329_v13 = vsub.f32 %v5042_v20, %v1328_v16 }
 0x139   :  { %3818 = vmatpush3.msra.mxu1 %v4750_v60  ;;  %3819 = vmatprep.mubr.msk.f32.mxu1 %vm4530_vm0, %v4529_v0  ;;  %v1301_v60 = vsub.f32 %v4978_v4, %v1300_v25  ;;  %v1288_v2 = vand.u32 4294901760, %v1287_v52  ;;  %v1163_v52 = vld [vmem:[#allocation5 + $0x108] sm:$0xff] }
 0x13a   :  { %3776 = vmatprep.subr.mxu0 %v4529_v0  ;;  %3820 = vmatmul.mubr.f32.vlgmr.msra.gmra.mxu1 %v4780_v21  ;;  %v1309_v61 = vand.u32 4294901760, %v1308_v44  ;;  %v1323_v30 = vand.u32 4294901760, %v1322_v62  ;;  %v1330_v24 = vand.u32 4294901760, %v1329_v13  ;;  %v1162_v44 = vld [vmem:[#allocation5 + $0x100] sm:$0xff] }
 0x13b   :  { %3777 = vmatpush3.msra.mxu0 %v6048_v17  ;;  %3784 = vmatprep.mubr.msk.f32.mxu0 %vm4530_vm0, %v4529_v0  ;;  %v1302_v48 = vand.u32 4294901760, %v1301_v60  ;;  %v1335_v17 = vand.u32 4294901760, %v5051_v54 }
 0x13c   :  { %3778 = vmatprep.subr.mxu0 %v4529_v0  ;;  %3857 = vmatprep.subr.mxu1 %v4529_v0 }
 0x13d   :  { %3779 = vmatpush3.msra.mxu0 %v6049_v18  ;;  %3889 = vmatprep.mubr.msk.f32.mxu1 %vm4530_vm0, %v4529_v0  ;;  %v5063_v18 = vsub.f32 %v1167_v27, %v5053_v35  ;;  %v1336_v29 = vsub.f32 %v5051_v54, %v1335_v17 }
 0x13e   :  { %3780 = vmatprep.subr.mxu0 %v4529_v0  ;;  %3858 = vmatpush3.msra.mxu1 %v1274_v26  ;;  %v5086_v26 = vand.u32 4294901760, %v1164_v42 }
 0x13f   :  { %3781 = vmatpush3.msra.mxu0 %v6050_v22  ;;  %3859 = vmatprep.subr.mxu1 %v4529_v0  ;;  %v5065_v22 = vand.u32 4294901760, %v1166_v9  ;;  %v1342_v33 = vand.u32 4294901760, %v5063_v18  ;;  %v1337_v45 = vand.u32 4294901760, %v1336_v29 }
 0x140   :  { %3782 = vmatprep.subr.mxu0 %v4529_v0  ;;  %3860 = vmatpush3.msra.mxu1 %v1281_v59  ;;  %v5097_v60 = vsub.f32 %v1164_v42, %v5086_v26 }
 0x141   :  { %3783 = vmatpush3.msra.mxu0 %v6051_v23  ;;  %3861 = vmatprep.subr.mxu1 %v4529_v0  ;;  %v1165_v23 = vld [vmem:[#allocation5 + $0x118] sm:$0xff]  ;;  %v5075_v36 = vsub.f32 %v1166_v9, %v5065_v22  ;;  %v1343_v46 = vsub.f32 %v5063_v18, %v1342_v33 }
 0x142   :  { %3785 = vmatmul.mubr.f32.vlgmr.msra.gmra.mxu0 %v4780_v21  ;;  %3822 = vmatprep.subr.mxu0 %v4529_v0  ;;  %v1293_v21 = vand.u32 4294901760, %v4975_v3  ;;  %v5079_v37 = vand.u32 4294901760, %v1165_v23  ;;  %v6036_v55 = vand.u32 4294901760, %v5097_v60 }
 0x143   :  { %3854 = vmatprep.mubr.msk.f32.mxu0 %vm4530_vm0, %v4529_v0  ;;  %3823 = vmatpush3.msra.mxu0 %v4947_v28  ;;  %v1349_v7 = vand.u32 4294901760, %v5075_v36 }
 0x144   :  { %3824 = vmatprep.subr.mxu0 %v4529_v0  ;;  %v1294_v58 = vsub.f32 %v4975_v3, %v1293_v21  ;;  %3862 = vmatpush3.msra.mxu1 %v1288_v2  ;;  %v5090_v39 = vsub.f32 %v1165_v23, %v5079_v37  ;;  %v5099_v2 = vand.u32 4294901760, %v1163_v52  ;;  %v1364_v10 = vsub.f32 %v5097_v60, %v6036_v55 }
 0x145   :  { %3825 = vmatpush3.msra.mxu0 %v4952_v32  ;;  %3863 = vmatprep.subr.mxu1 %v4529_v0  ;;  %v1350_v59 = vsub.f32 %v5075_v36, %v1349_v7 }
 0x146   :  { %3826 = vmatprep.subr.mxu0 %v4529_v0  ;;  %v1295_v34 = vand.u32 4294901760, %v1294_v58  ;;  %v1344_v58 = vand.u32 4294901760, %v1343_v46  ;;  %v5107_v57 = vsub.f32 %v1163_v52, %v5099_v2  ;;  %v1365_v9 = vand.u32 4294901760, %v1364_v10 }
 0x147   :  { %3827 = vmatpush3.msra.mxu0 %v4955_v38 }
 0x148   :  { %3828 = vmatprep.subr.mxu0 %v4529_v0  ;;  %3864 = vmatpush3.msra.mxu1 %v1295_v34  ;;  %v6037_v34 = vand.u32 4294901760, %v5090_v39 }
 0x149   :  { %3829 = vmatpush3.msra.mxu0 %v4957_v40  ;;  %3865 = vmatprep.subr.mxu1 %v4529_v0 }
 0x14a   :  { %3830 = vmatprep.subr.mxu0 %v4529_v0  ;;  %3866 = vmatpush3.msra.mxu1 %v1302_v48  ;;  %v1351_v48 = vand.u32 4294901760, %v1350_v59  ;;  %v1357_v62 = vsub.f32 %v5090_v39, %v6037_v34 }
 0x14b   :  { %3831 = vmatpush3.msra.mxu0 %v4959_v41  ;;  %3867 = vmatprep.subr.mxu1 %v4529_v0 }
 0x14c   :  { %3832 = vmatprep.subr.mxu0 %v4529_v0  ;;  %3868 = vmatpush3.msra.mxu1 %v1309_v61  ;;  %v5109_v61 = vand.u32 4294901760, %v1162_v44 }
 0x14d   :  { %3833 = vmatpush3.msra.mxu0 %v4967_v53  ;;  %3869 = vmatprep.subr.mxu1 %v4529_v0 }
 0x14e   :  { %3834 = vmatprep.subr.mxu0 %v4529_v0  ;;  %3870 = vmatpush3.msra.mxu1 %v1316_v11  ;;  %v6035_v11 = vand.u32 4294901760, %v5107_v57  ;;  %v5122_v27 = vsub.f32 %v1162_v44, %v5109_v61 }
 0x14f   :  { %3835 = vmatpush3.msra.mxu0 %v4969_v56  ;;  %3871 = vmatprep.subr.mxu1 %v4529_v0 }
 0x150   :  { %3836 = vmatprep.subr.mxu0 %v4529_v0  ;;  %3872 = vmatpush3.msra.mxu1 %v1323_v30  ;;  %v1358_v30 = vand.u32 4294901760, %v1357_v62  ;;  %v1371_v13 = vsub.f32 %v5107_v57, %v6035_v11  ;;  %v6034_v23 = vand.u32 4294901760, %v5122_v27 }
 0x151   :  { %3837 = vmatpush3.msra.mxu0 %v4981_v6  ;;  %3873 = vmatprep.subr.mxu1 %v4529_v0 }
 0x152   :  { %3838 = vmatprep.subr.mxu0 %v4529_v0  ;;  %3874 = vmatpush3.msra.mxu1 %v1330_v24  ;;  %v1372_v24 = vand.u32 4294901760, %v1371_v13  ;;  %v1378_v29 = vsub.f32 %v5122_v27, %v6034_v23 }
 0x153   :  { %3839 = vmatpush3.msra.mxu0 %v5036_v5  ;;  %3875 = vmatprep.subr.mxu1 %v4529_v0 }
 0x154   :  { %3840 = vmatprep.subr.mxu0 %v4529_v0  ;;  %3876 = vmatpush3.msra.mxu1 %v1337_v45  ;;  %v1379_v42 = vand.u32 4294901760, %v1378_v29 }
 0x155   :  { %3841 = vmatpush3.msra.mxu0 %v5044_v19  ;;  %3877 = vmatprep.subr.mxu1 %v4529_v0 }
 0x156   :  { %3842 = vmatprep.subr.mxu0 %v4529_v0  ;;  %3878 = vmatpush3.msra.mxu1 %v1344_v58 }
 0x157   :  { %3843 = vmatpush3.msra.mxu0 %v5053_v35  ;;  %3879 = vmatprep.subr.mxu1 %v4529_v0 }
 0x158   :  { %3844 = vmatprep.subr.mxu0 %v4529_v0  ;;  %3880 = vmatpush3.msra.mxu1 %v1351_v48 }
 0x159   :  { %3845 = vmatpush3.msra.mxu0 %v5065_v22  ;;  %3881 = vmatprep.subr.mxu1 %v4529_v0 }
 0x15a   :  { %3846 = vmatprep.subr.mxu0 %v4529_v0  ;;  %3882 = vmatpush3.msra.mxu1 %v1358_v30 }
 0x15b   :  { %3847 = vmatpush3.msra.mxu0 %v5079_v37  ;;  %3883 = vmatprep.subr.mxu1 %v4529_v0 }
 0x15c   :  { %3848 = vmatprep.subr.mxu0 %v4529_v0  ;;  %3884 = vmatpush3.msra.mxu1 %v1365_v9 }
 0x15d   :  { %3849 = vmatpush3.msra.mxu0 %v5086_v26  ;;  %3885 = vmatprep.subr.mxu1 %v4529_v0 }
 0x15e   :  { %3850 = vmatprep.subr.mxu0 %v4529_v0  ;;  %3886 = vmatpush3.msra.mxu1 %v1372_v24 }
 0x15f   :  { %3851 = vmatpush3.msra.mxu0 %v5099_v2  ;;  %3887 = vmatprep.subr.mxu1 %v4529_v0 }
 0x160   :  { %3852 = vmatprep.subr.mxu0 %v4529_v0  ;;  %3888 = vmatpush3.msra.mxu1 %v1379_v42 }
 0x161   :  { %3853 = vmatpush3.msra.mxu0 %v5109_v61  ;;  %3927 = vmatprep.subr.mxu1 %v4529_v0 }
 0x162   :  { %3892 = vmatprep.subr.mxu0 %v4529_v0 }
 0x1b8   :  { %v757_v45 = vpop.f32.mrf.mxu1 }
 0x1ba   :  { %v3681_v46 = vpop.f32.mrf.mxu1 }
 0x1c0   :  { %v606_v52 = vpop.f32.mrf.mxu0 }
 0x1c1   :  { %v758_v30 = vadd.f32 %v757_v45, %v606_v52 }
 0x1c2   :  { %v3646_v58 = vpop.f32.mrf.mxu0 }
 0x1d8   :  { %v950_v59 = vpop.f32.mrf.mxu1 }
 0x1da   :  { %v3751_v44 = vpop.f32.mrf.mxu1 }
 0x1e1   :  { %v861_v48 = vpop.f32.mrf.mxu0 }
 0x1e2   :  { %v862_v13 = vadd.f32 %v861_v48, %v758_v30 }
 0x1e3   :  { %v3716_v62 = vpop.f32.mrf.mxu0 }
 0x1e4   :  { %v951_v23 = vadd.f32 %v950_v59, %v862_v13  ;;  %v1828_v59 = vld [vmem:[#allocation5 + $0x1b8] sm:$0xff] }
 0x1e5   :  { %v5395_v62 = vand.u32 4294901760, %v1828_v59 }
 0x1fa   :  { %v1156_v10 = vpop.f32.mrf.mxu1 }
 0x1fc   :  { %v3821_v9 = vpop.f32.mrf.mxu1 }
 0x1fd   :  { %v5401_v9 = vsub.f32 %v1828_v59, %v5395_v62 }
 0x202   :  { %v1069_v29 = vpop.f32.mrf.mxu0 }
 0x203   :  { %v1070_v24 = vadd.f32 %v1069_v29, %v951_v23  ;;  %v1826_v29 = vld [vmem:[#allocation5 + $0x1a8] sm:$0xff] }
 0x204   :  { %v3786_v11 = vpop.f32.mrf.mxu0 }
 0x205   :  { %v1157_v55 = vadd.f32 %v1156_v10, %v1070_v24  ;;  %v1827_v10 = vld [vmem:[#allocation5 + $0x1b0] sm:$0xff] }
 0x206   :  { %v5403_v13 = vand.u32 4294901760, %v1827_v10 }
 0x207   :  { %v1160_v42 = vmax.f32 %v1157_v55, 0.0 }
 0x209   :  { %v5139_v34 = vand.u32 4294901760, %v1160_v42 }
 0x20b   :  { %v5142_v46 = vsub.f32 %v1160_v42, %v5139_v34  ;;  %3890 = vmatmul.mubr.f32.vlgmr.msra.gmra.mxu1 %v5139_v34  ;;  %v1987_v42 = vand.u32 4294901760, %v5401_v9 }
 0x20c   :  { %3928 = vmatpush3.msra.mxu1 %v4947_v28  ;;  %3959 = vmatprep.mubr.msk.f32.mxu1 %vm4530_vm0, %v4529_v0 }
 0x20d   :  { %v1261_v45 = vand.u32 4294901760, %v5142_v46  ;;  %3929 = vmatprep.subr.mxu1 %v4529_v0 }
 0x20e   :  { %3930 = vmatpush3.msra.mxu1 %v4952_v32 }
 0x20f   :  { %3931 = vmatprep.subr.mxu1 %v4529_v0  ;;  %v1262_v55 = vsub.f32 %v5142_v46, %v1261_v45 }
 0x210   :  { %3932 = vmatpush3.msra.mxu1 %v4955_v38 }
 0x211   :  { %3933 = vmatprep.subr.mxu1 %v4529_v0  ;;  %v1263_v11 = vand.u32 4294901760, %v1262_v55  ;;  %v1825_v55 = vld [vmem:[#allocation5 + $0x1a0] sm:$0xff] }
 0x212   :  { %3934 = vmatpush3.msra.mxu1 %v4957_v40 }
 0x213   :  { %3935 = vmatprep.subr.mxu1 %v4529_v0  ;;  %3855 = vmatmul.mubr.f32.vlgmr.msra.gmra.mxu0 %v1263_v11  ;;  %v1988_v11 = vsub.f32 %v5401_v9, %v1987_v42 }
 0x214   :  { %3893 = vmatpush3.msra.mxu0 %v4950_v31  ;;  %3936 = vmatpush3.msra.mxu1 %v4959_v41  ;;  %v6053_v31 = vand.u32 4294901760, %v5097_v60 }
 0x215   :  { %3894 = vmatprep.subr.mxu0 %v4529_v0  ;;  %3937 = vmatprep.subr.mxu1 %v4529_v0 }
 0x216   :  { %3895 = vmatpush3.msra.mxu0 %v4964_v50  ;;  %3938 = vmatpush3.msra.mxu1 %v4967_v53 }
 0x217   :  { %3896 = vmatprep.subr.mxu0 %v4529_v0  ;;  %3939 = vmatprep.subr.mxu1 %v4529_v0 }
 0x218   :  { %3897 = vmatpush3.msra.mxu0 %v4972_v1  ;;  %3940 = vmatpush3.msra.mxu1 %v4969_v56  ;;  %v1833_v1 = vld [vmem:[#allocation5 + $0x1e0] sm:$0xff] }
 0x219   :  { %3898 = vmatprep.subr.mxu0 %v4529_v0  ;;  %3941 = vmatprep.subr.mxu1 %v4529_v0 }
 0x21a   :  { %3899 = vmatpush3.msra.mxu0 %v4975_v3  ;;  %3942 = vmatpush3.msra.mxu1 %v4981_v6  ;;  %v1832_v3 = vld [vmem:[#allocation5 + $0x1d8] sm:$0xff] }
 0x21b   :  { %3900 = vmatprep.subr.mxu0 %v4529_v0  ;;  %3943 = vmatprep.subr.mxu1 %v4529_v0 }
 0x21c   :  { %3901 = vmatpush3.msra.mxu0 %v4978_v4  ;;  %3944 = vmatpush3.msra.mxu1 %v5036_v5 }
 0x21d   :  { %3902 = vmatprep.subr.mxu0 %v4529_v0  ;;  %3945 = vmatprep.subr.mxu1 %v4529_v0 }
 0x21e   :  { %3903 = vmatpush3.msra.mxu0 %v4988_v12  ;;  %3946 = vmatpush3.msra.mxu1 %v5044_v19  ;;  %v1831_v12 = vld [vmem:[#allocation5 + $0x1d0] sm:$0xff] }
 0x21f   :  { %3904 = vmatprep.subr.mxu0 %v4529_v0  ;;  %3947 = vmatprep.subr.mxu1 %v4529_v0 }
 0x220   :  { %3905 = vmatpush3.msra.mxu0 %v4992_v14  ;;  %3948 = vmatpush3.msra.mxu1 %v5053_v35  ;;  %v1830_v14 = vld [vmem:[#allocation5 + $0x1c8] sm:$0xff] }
 0x221   :  { %3906 = vmatprep.subr.mxu0 %v4529_v0  ;;  %3949 = vmatprep.subr.mxu1 %v4529_v0 }
 0x222   :  { %3907 = vmatpush3.msra.mxu0 %v5004_v51  ;;  %3950 = vmatpush3.msra.mxu1 %v5065_v22  ;;  %v5328_v51 = vand.u32 4294901760, %v1830_v14 }
 0x223   :  { %3908 = vmatprep.subr.mxu0 %v4529_v0  ;;  %3951 = vmatprep.subr.mxu1 %v4529_v0 }
 0x224   :  { %3909 = vmatpush3.msra.mxu0 %v5042_v20  ;;  %3952 = vmatpush3.msra.mxu1 %v5079_v37 }
 0x225   :  { %3910 = vmatprep.subr.mxu0 %v4529_v0  ;;  %3953 = vmatprep.subr.mxu1 %v4529_v0 }
 0x226   :  { %3911 = vmatpush3.msra.mxu0 %v5051_v54  ;;  %3954 = vmatpush3.msra.mxu1 %v5086_v26 }
 0x227   :  { %3912 = vmatprep.subr.mxu0 %v4529_v0  ;;  %3955 = vmatprep.subr.mxu1 %v4529_v0 }
 0x228   :  { %3913 = vmatpush3.msra.mxu0 %v5063_v18  ;;  %3956 = vmatpush3.msra.mxu1 %v5099_v2 }
 0x229   :  { %3914 = vmatprep.subr.mxu0 %v4529_v0  ;;  %3957 = vmatprep.subr.mxu1 %v4529_v0 }
 0x22a   :  { %3915 = vmatpush3.msra.mxu0 %v5075_v36  ;;  %3958 = vmatpush3.msra.mxu1 %v5109_v61 }
 0x22b   :  { %3916 = vmatprep.subr.mxu0 %v4529_v0  ;;  %3960 = vmatmul.mubr.f32.vlgmr.msra.gmra.mxu1 %v1261_v45  ;;  %v5412_v45 = vand.u32 4294901760, %v1826_v29 }
 0x22c   :  { %3997 = vmatprep.subr.mxu1 %v4529_v0  ;;  %3917 = vmatpush3.msra.mxu0 %v5090_v39 }
 0x22d   :  { %3998 = vmatpush3.msra.mxu1 %v4947_v28  ;;  %3918 = vmatprep.subr.mxu0 %v4529_v0  ;;  %v6052_v28 = vand.u32 4294901760, %v5090_v39 }
 0x22e   :  { %3999 = vmatprep.subr.mxu1 %v4529_v0  ;;  %3919 = vmatpush3.msra.mxu0 %v5097_v60 }
 0x22f   :  { %4000 = vmatpush3.msra.mxu1 %v4952_v32  ;;  %3920 = vmatprep.subr.mxu0 %v4529_v0  ;;  %v6054_v32 = vand.u32 4294901760, %v5107_v57 }
 0x230   :  { %4001 = vmatprep.subr.mxu1 %v4529_v0  ;;  %3921 = vmatpush3.msra.mxu0 %v5107_v57 }
 0x231   :  { %4002 = vmatpush3.msra.mxu1 %v4955_v38  ;;  %3922 = vmatprep.subr.mxu0 %v4529_v0  ;;  %v6055_v38 = vand.u32 4294901760, %v5122_v27 }
 0x232   :  { %4003 = vmatprep.subr.mxu1 %v4529_v0  ;;  %3923 = vmatpush3.msra.mxu0 %v5122_v27 }
 0x233   :  { %3924 = vmatprep.mubr.msk.f32.mxu0 %vm4530_vm0, %v4529_v0  ;;  %4004 = vmatpush3.msra.mxu1 %v4957_v40  ;;  %v1836_v40 = vld [vmem:[#allocation5 + $0x1f8] sm:$0xff] }
 0x234   :  { %3925 = vmatmul.mubr.f32.vlgmr.msra.gmra.mxu0 %v5142_v46  ;;  %3962 = vmatprep.subr.mxu0 %v4529_v0  ;;  %v5410_v46 = vsub.f32 %v1827_v10, %v5403_v13 }
 0x235   :  { %4005 = vmatprep.subr.mxu1 %v4529_v0  ;;  %3963 = vmatpush3.msra.mxu0 %v1272_v49  ;;  %v1835_v49 = vld [vmem:[#allocation5 + $0x1f0] sm:$0xff] }
 0x236   :  { %4006 = vmatpush3.msra.mxu1 %v4959_v41  ;;  %3964 = vmatprep.subr.mxu0 %v4529_v0  ;;  %v5306_v41 = vand.u32 4294901760, %v1836_v40 }
 0x237   :  { %4007 = vmatprep.subr.mxu1 %v4529_v0  ;;  %3965 = vmatpush3.msra.mxu0 %v1279_v8  ;;  %v5318_v8 = vand.u32 4294901760, %v1832_v3 }
 0x238   :  { %4008 = vmatpush3.msra.mxu1 %v4967_v53  ;;  %3966 = vmatprep.subr.mxu0 %v4529_v0  ;;  %v5309_v50 = vsub.f32 %v1836_v40, %v5306_v41  ;;  %v5311_v53 = vand.u32 4294901760, %v1835_v49  ;;  %v1989_v40 = vand.u32 4294901760, %v1988_v11 }
 0x239   :  { %4009 = vmatprep.subr.mxu1 %v4529_v0  ;;  %3967 = vmatpush3.msra.mxu0 %v1286_v15  ;;  %v1829_v15 = vld [vmem:[#allocation5 + $0x1c0] sm:$0xff] }
 0x23a   :  { %4010 = vmatpush3.msra.mxu1 %v4969_v56  ;;  %3968 = vmatprep.subr.mxu0 %v4529_v0  ;;  %v1834_v56 = vld [vmem:[#allocation5 + $0x1e8] sm:$0xff]  ;;  %v5340_v20 = vand.u32 4294901760, %v1829_v15 }
 0x23b   :  { %4011 = vmatprep.subr.mxu1 %v4529_v0  ;;  %3969 = vmatpush3.msra.mxu0 %v1293_v21  ;;  %v5314_v4 = vand.u32 4294901760, %v1834_v56  ;;  %v1931_v21 = vand.u32 4294901760, %v5309_v50 }
 0x23c   :  { %4012 = vmatpush3.msra.mxu1 %v4981_v6  ;;  %3970 = vmatprep.subr.mxu0 %v4529_v0  ;;  %v5316_v6 = vand.u32 4294901760, %v1833_v1 }
 0x23d   :  { %4013 = vmatprep.subr.mxu1 %v4529_v0  ;;  %3971 = vmatpush3.msra.mxu0 %v1300_v25  ;;  %v5323_v25 = vsub.f32 %v1835_v49, %v5311_v53 }
 0x23e   :  { %4014 = vmatpush3.msra.mxu1 %v5036_v5  ;;  %3972 = vmatprep.subr.mxu0 %v4529_v0  ;;  %v5337_v5 = vsub.f32 %v1832_v3, %v5318_v8 }
 0x23f   :  { %4015 = vmatprep.subr.mxu1 %v4529_v0  ;;  %3973 = vmatpush3.msra.mxu0 %v1307_v43  ;;  %v5326_v43 = vand.u32 4294901760, %v1831_v12 }
 0x240   :  { %4016 = vmatpush3.msra.mxu1 %v5044_v19  ;;  %3974 = vmatprep.subr.mxu0 %v4529_v0  ;;  %v1932_v19 = vsub.f32 %v5309_v50, %v1931_v21 }
 0x241   :  { %4017 = vmatprep.subr.mxu1 %v4529_v0  ;;  %3975 = vmatpush3.msra.mxu0 %v1314_v63  ;;  %v5331_v63 = vsub.f32 %v1834_v56, %v5314_v4  ;;  %v5347_v54 = vsub.f32 %v1831_v12, %v5326_v43  ;;  %v1823_v12 = vld [vmem:[#allocation5 + $0x190] sm:$0xff] }
 0x242   :  { %4018 = vmatpush3.msra.mxu1 %v5053_v35  ;;  %3976 = vmatprep.subr.mxu0 %v4529_v0  ;;  %v5351_v35 = vsub.f32 %v1830_v14, %v5328_v51 }
 0x243   :  { %4019 = vmatprep.subr.mxu1 %v4529_v0  ;;  %3977 = vmatpush3.msra.mxu0 %v1321_v47  ;;  %v5334_v47 = vsub.f32 %v1833_v1, %v5316_v6 }
 0x244   :  { %4020 = vmatpush3.msra.mxu1 %v5065_v22  ;;  %3978 = vmatprep.subr.mxu0 %v4529_v0  ;;  %v1959_v22 = vand.u32 4294901760, %v5337_v5 }
 0x245   :  { %4021 = vmatprep.subr.mxu1 %v4529_v0  ;;  %3979 = vmatpush3.msra.mxu0 %v1328_v16  ;;  %v1938_v16 = vand.u32 4294901760, %v5323_v25  ;;  %v1952_v18 = vand.u32 4294901760, %v5334_v47 }
 0x246   :  { %4022 = vmatpush3.msra.mxu1 %v5079_v37  ;;  %3980 = vmatprep.subr.mxu0 %v4529_v0  ;;  %v1966_v37 = vand.u32 4294901760, %v5347_v54 }
 0x247   :  { %4023 = vmatprep.subr.mxu1 %v4529_v0  ;;  %3981 = vmatpush3.msra.mxu0 %v1335_v17  ;;  %v1945_v17 = vand.u32 4294901760, %v5331_v63  ;;  %v1939_v36 = vsub.f32 %v5323_v25, %v1938_v16  ;;  %v1953_v39 = vsub.f32 %v5334_v47, %v1952_v18 }
 0x248   :  { %4024 = vmatpush3.msra.mxu1 %v5086_v26  ;;  %3982 = vmatprep.subr.mxu0 %v4529_v0  ;;  %v1967_v27 = vsub.f32 %v5347_v54, %v1966_v37 }
 0x249   :  { %4025 = vmatprep.subr.mxu1 %v4529_v0  ;;  %3983 = vmatpush3.msra.mxu0 %v1342_v33  ;;  %v1933_v33 = vand.u32 4294901760, %v1932_v19  ;;  %v1946_v26 = vsub.f32 %v5331_v63, %v1945_v17  ;;  %v1940_v60 = vand.u32 4294901760, %v1939_v36 }
 0x24a   :  { %4026 = vmatpush3.msra.mxu1 %v5099_v2  ;;  %3984 = vmatprep.subr.mxu0 %v4529_v0  ;;  %v1960_v2 = vsub.f32 %v5337_v5, %v1959_v22  ;;  %v1968_v44 = vand.u32 4294901760, %v1967_v27  ;;  %v1821_v27 = vld [vmem:[#allocation5 + $0x180] sm:$0xff] }
 0x24b   :  { %4027 = vmatprep.subr.mxu1 %v4529_v0  ;;  %3985 = vmatpush3.msra.mxu0 %v1349_v7  ;;  %v5363_v7 = vsub.f32 %v1829_v15, %v5340_v20  ;;  %v1947_v57 = vand.u32 4294901760, %v1946_v26  ;;  %v1822_v26 = vld [vmem:[#allocation5 + $0x188] sm:$0xff] }
 0x24c   :  { %4028 = vmatpush3.msra.mxu1 %v5109_v61  ;;  %4029 = vmatprep.mubr.msk.f32.mxu1 %vm4530_vm0, %v4529_v0  ;;  %v1954_v61 = vand.u32 4294901760, %v1953_v39  ;;  %v1961_v52 = vand.u32 4294901760, %v1960_v2 }
 0x24d   :  { %3986 = vmatprep.subr.mxu0 %v4529_v0  ;;  %4030 = vmatmul.mubr.f32.vlgmr.msra.gmra.mxu1 %v5139_v34  ;;  %v1980_v23 = vand.u32 4294901760, %v5363_v7 }
 0x24e   :  { %3987 = vmatpush3.msra.mxu0 %v6052_v28  ;;  %3994 = vmatprep.mubr.msk.f32.mxu0 %vm4530_vm0, %v4529_v0  ;;  %v1994_v28 = vand.u32 4294901760, %v5410_v46 }
 0x24f   :  { %3988 = vmatprep.subr.mxu0 %v4529_v0  ;;  %4067 = vmatprep.subr.mxu1 %v4529_v0  ;;  %v1981_v48 = vsub.f32 %v5363_v7, %v1980_v23 }
 0x250   :  { %3989 = vmatpush3.msra.mxu0 %v6053_v31  ;;  %4099 = vmatprep.mubr.msk.f32.mxu1 %vm4530_vm0, %v4529_v0  ;;  %v5422_v31 = vsub.f32 %v1826_v29, %v5412_v45  ;;  %v1995_v49 = vsub.f32 %v5410_v46, %v1994_v28 }
 0x251   :  { %3990 = vmatprep.subr.mxu0 %v4529_v0  ;;  %4068 = vmatpush3.msra.mxu1 %v1933_v33  ;;  %v1982_v24 = vand.u32 4294901760, %v1981_v48  ;;  %v5445_v33 = vand.u32 4294901760, %v1823_v12 }
 0x252   :  { %3991 = vmatpush3.msra.mxu0 %v6054_v32  ;;  %4069 = vmatprep.subr.mxu1 %v4529_v0  ;;  %v5424_v32 = vand.u32 4294901760, %v1825_v55  ;;  %v2001_v56 = vand.u32 4294901760, %v5422_v31  ;;  %v1996_v14 = vand.u32 4294901760, %v1995_v49 }
 0x253   :  { %3992 = vmatprep.subr.mxu0 %v4529_v0  ;;  %4070 = vmatpush3.msra.mxu1 %v1940_v60  ;;  %v5456_v2 = vsub.f32 %v1823_v12, %v5445_v33 }
 0x254   :  { %3993 = vmatpush3.msra.mxu0 %v6055_v38  ;;  %4071 = vmatprep.subr.mxu1 %v4529_v0  ;;  %v1824_v38 = vld [vmem:[#allocation5 + $0x198] sm:$0xff]  ;;  %v5434_v1 = vsub.f32 %v1825_v55, %v5424_v32  ;;  %v2002_v15 = vsub.f32 %v5422_v31, %v2001_v56 }
 0x255   :  { %3995 = vmatmul.mubr.f32.vlgmr.msra.gmra.mxu0 %v5139_v34  ;;  %4032 = vmatprep.subr.mxu0 %v4529_v0  ;;  %v1973_v34 = vand.u32 4294901760, %v5351_v35  ;;  %v5438_v3 = vand.u32 4294901760, %v1824_v38 }
 0x256   :  { %4064 = vmatprep.mubr.msk.f32.mxu0 %vm4530_vm0, %v4529_v0  ;;  %4033 = vmatpush3.msra.mxu0 %v5306_v41  ;;  %v2008_v19 = vand.u32 4294901760, %v5434_v1  ;;  %v2003_v39 = vand.u32 4294901760, %v2002_v15 }
 0x257   :  { %4034 = vmatprep.subr.mxu0 %v4529_v0  ;;  %4072 = vmatpush3.msra.mxu1 %v1947_v57  ;;  %v1974_v58 = vsub.f32 %v5351_v35, %v1973_v34  ;;  %v5449_v36 = vsub.f32 %v1824_v38, %v5438_v3  ;;  %v5458_v57 = vand.u32 4294901760, %v1822_v26 }
 0x258   :  { %4035 = vmatpush3.msra.mxu0 %v5311_v53  ;;  %4073 = vmatprep.subr.mxu1 %v4529_v0  ;;  %v2009_v60 = vsub.f32 %v5434_v1, %v2008_v19 }
 0x259   :  { %4036 = vmatprep.subr.mxu0 %v4529_v0  ;;  %4074 = vmatpush3.msra.mxu1 %v1954_v61  ;;  %v1975_v30 = vand.u32 4294901760, %v1974_v58  ;;  %v6041_v61 = vand.u32 4294901760, %v5449_v36  ;;  %v6040_v58 = vand.u32 4294901760, %v5456_v2  ;;  %v5466_v59 = vsub.f32 %v1822_v26, %v5458_v57 }
 0x25a   :  { %4037 = vmatpush3.msra.mxu0 %v5314_v4  ;;  %4075 = vmatprep.subr.mxu1 %v4529_v0 }
 0x25b   :  { %4038 = vmatprep.subr.mxu0 %v4529_v0  ;;  %4076 = vmatpush3.msra.mxu1 %v1961_v52  ;;  %v2010_v52 = vand.u32 4294901760, %v2009_v60  ;;  %v2016_v48 = vsub.f32 %v5449_v36, %v6041_v61  ;;  %v2023_v10 = vsub.f32 %v5456_v2, %v6040_v58 }
 0x25c   :  { %4039 = vmatpush3.msra.mxu0 %v5316_v6  ;;  %4077 = vmatprep.subr.mxu1 %v4529_v0 }
 0x25d   :  { %4040 = vmatprep.subr.mxu0 %v4529_v0  ;;  %4078 = vmatpush3.msra.mxu1 %v1968_v44  ;;  %v5468_v44 = vand.u32 4294901760, %v1821_v27  ;;  %v2024_v55 = vand.u32 4294901760, %v2023_v10 }
 0x25e   :  { %4041 = vmatpush3.msra.mxu0 %v5318_v8  ;;  %4079 = vmatprep.subr.mxu1 %v4529_v0 }
 0x25f   :  { %4042 = vmatprep.subr.mxu0 %v4529_v0  ;;  %4080 = vmatpush3.msra.mxu1 %v1975_v30  ;;  %v6039_v30 = vand.u32 4294901760, %v5466_v59  ;;  %v5481_v29 = vsub.f32 %v1821_v27, %v5468_v44 }
 0x260   :  { %4043 = vmatpush3.msra.mxu0 %v5326_v43  ;;  %4081 = vmatprep.subr.mxu1 %v4529_v0 }
 0x261   :  { %4044 = vmatprep.subr.mxu0 %v4529_v0  ;;  %4082 = vmatpush3.msra.mxu1 %v1982_v24  ;;  %v2017_v24 = vand.u32 4294901760, %v2016_v48  ;;  %v2030_v11 = vsub.f32 %v5466_v59, %v6039_v30  ;;  %v6038_v38 = vand.u32 4294901760, %v5481_v29 }
 0x262   :  { %4045 = vmatpush3.msra.mxu0 %v5328_v51  ;;  %4083 = vmatprep.subr.mxu1 %v4529_v0 }
 0x263   :  { %4046 = vmatprep.subr.mxu0 %v4529_v0  ;;  %4084 = vmatpush3.msra.mxu1 %v1989_v40  ;;  %v2031_v40 = vand.u32 4294901760, %v2030_v11  ;;  %v2037_v49 = vsub.f32 %v5481_v29, %v6038_v38 }
 0x264   :  { %4047 = vmatpush3.msra.mxu0 %v5340_v20  ;;  %4085 = vmatprep.subr.mxu1 %v4529_v0 }
 0x265   :  { %4048 = vmatprep.subr.mxu0 %v4529_v0  ;;  %4086 = vmatpush3.msra.mxu1 %v1996_v14  ;;  %v2038_v12 = vand.u32 4294901760, %v2037_v49 }
 0x266   :  { %4049 = vmatpush3.msra.mxu0 %v5395_v62  ;;  %4087 = vmatprep.subr.mxu1 %v4529_v0 }
 0x267   :  { %4050 = vmatprep.subr.mxu0 %v4529_v0  ;;  %4088 = vmatpush3.msra.mxu1 %v2003_v39 }
 0x268   :  { %4051 = vmatpush3.msra.mxu0 %v5403_v13  ;;  %4089 = vmatprep.subr.mxu1 %v4529_v0 }
 0x269   :  { %4052 = vmatprep.subr.mxu0 %v4529_v0  ;;  %4090 = vmatpush3.msra.mxu1 %v2010_v52 }
 0x26a   :  { %4053 = vmatpush3.msra.mxu0 %v5412_v45  ;;  %4091 = vmatprep.subr.mxu1 %v4529_v0 }
 0x26b   :  { %4054 = vmatprep.subr.mxu0 %v4529_v0  ;;  %4092 = vmatpush3.msra.mxu1 %v2017_v24 }
 0x26c   :  { %4055 = vmatpush3.msra.mxu0 %v5424_v32  ;;  %4093 = vmatprep.subr.mxu1 %v4529_v0 }
 0x26d   :  { %4056 = vmatprep.subr.mxu0 %v4529_v0  ;;  %4094 = vmatpush3.msra.mxu1 %v2024_v55 }
 0x26e   :  { %4057 = vmatpush3.msra.mxu0 %v5438_v3  ;;  %4095 = vmatprep.subr.mxu1 %v4529_v0 }
 0x26f   :  { %4058 = vmatprep.subr.mxu0 %v4529_v0  ;;  %4096 = vmatpush3.msra.mxu1 %v2031_v40 }
 0x270   :  { %4059 = vmatpush3.msra.mxu0 %v5445_v33  ;;  %4097 = vmatprep.subr.mxu1 %v4529_v0 }
 0x271   :  { %4060 = vmatprep.subr.mxu0 %v4529_v0  ;;  %4098 = vmatpush3.msra.mxu1 %v2038_v12 }
 0x272   :  { %4061 = vmatpush3.msra.mxu0 %v5458_v57  ;;  %4137 = vmatprep.subr.mxu1 %v4529_v0 }
 0x273   :  { %4062 = vmatprep.subr.mxu0 %v4529_v0 }
 0x274   :  { %4063 = vmatpush3.msra.mxu0 %v5468_v44 }
 0x275   :  { %4102 = vmatprep.subr.mxu0 %v4529_v0 }
 0x2cb   :  { %v1416_v14 = vpop.f32.mrf.mxu1 }
 0x2cd   :  { %v3891_v15 = vpop.f32.mrf.mxu1 }
 0x2d3   :  { %v1265_v26 = vpop.f32.mrf.mxu0 }
 0x2d4   :  { %v1417_v24 = vadd.f32 %v1416_v14, %v1265_v26 }
 0x2d5   :  { %v3856_v39 = vpop.f32.mrf.mxu0 }
 0x2eb   :  { %v1609_v60 = vpop.f32.mrf.mxu1 }
 0x2ed   :  { %v3961_v27 = vpop.f32.mrf.mxu1 }
 0x2f4   :  { %v1520_v52 = vpop.f32.mrf.mxu0 }
 0x2f5   :  { %v1521_v11 = vadd.f32 %v1520_v52, %v1417_v24 }
 0x2f6   :  { %v3926_v48 = vpop.f32.mrf.mxu0 }
 0x2f7   :  { %v1610_v38 = vadd.f32 %v1609_v60, %v1521_v11  ;;  %v2487_v60 = vld [vmem:[#allocation5 + $0x238] sm:$0xff] }
 0x2f8   :  { %v5754_v48 = vand.u32 4294901760, %v2487_v60 }
 0x30d   :  { %v1815_v10 = vpop.f32.mrf.mxu1 }
 0x30f   :  { %v4031_v55 = vpop.f32.mrf.mxu1 }
 0x310   :  { %v5760_v55 = vsub.f32 %v2487_v60, %v5754_v48 }
 0x315   :  { %v1728_v49 = vpop.f32.mrf.mxu0 }
 0x316   :  { %v1729_v40 = vadd.f32 %v1728_v49, %v1610_v38  ;;  %v2485_v49 = vld [vmem:[#allocation5 + $0x228] sm:$0xff] }
 0x317   :  { %v3996_v30 = vpop.f32.mrf.mxu0 }
 0x318   :  { %v1816_v58 = vadd.f32 %v1815_v10, %v1729_v40  ;;  %v2486_v10 = vld [vmem:[#allocation5 + $0x230] sm:$0xff] }
 0x319   :  { %v5762_v11 = vand.u32 4294901760, %v2486_v10 }
 0x31a   :  { %v1819_v12 = vmax.f32 %v1816_v58, 0.0 }
 0x31c   :  { %v5498_v61 = vand.u32 4294901760, %v1819_v12 }
 0x31e   :  { %v5501_v15 = vsub.f32 %v1819_v12, %v5498_v61  ;;  %4100 = vmatmul.mubr.f32.vlgmr.msra.gmra.mxu1 %v5498_v61  ;;  %v2646_v12 = vand.u32 4294901760, %v5760_v55 }
 0x31f   :  { %4138 = vmatpush3.msra.mxu1 %v5306_v41  ;;  %4169 = vmatprep.mubr.msk.f32.mxu1 %vm4530_vm0, %v4529_v0 }
 0x320   :  { %v1920_v14 = vand.u32 4294901760, %v5501_v15  ;;  %4139 = vmatprep.subr.mxu1 %v4529_v0 }
 0x321   :  { %4140 = vmatpush3.msra.mxu1 %v5311_v53 }
 0x322   :  { %4141 = vmatprep.subr.mxu1 %v4529_v0  ;;  %v1921_v58 = vsub.f32 %v5501_v15, %v1920_v14 }
 0x323   :  { %4142 = vmatpush3.msra.mxu1 %v5314_v4 }
 0x324   :  { %4143 = vmatprep.subr.mxu1 %v4529_v0  ;;  %v1922_v30 = vand.u32 4294901760, %v1921_v58  ;;  %v2484_v58 = vld [vmem:[#allocation5 + $0x220] sm:$0xff] }
 0x325   :  { %4144 = vmatpush3.msra.mxu1 %v5316_v6 }
 0x326   :  { %4145 = vmatprep.subr.mxu1 %v4529_v0  ;;  %4065 = vmatmul.mubr.f32.vlgmr.msra.gmra.mxu0 %v1922_v30  ;;  %v2647_v30 = vsub.f32 %v5760_v55, %v2646_v12 }
 0x327   :  { %4103 = vmatpush3.msra.mxu0 %v5309_v50  ;;  %4146 = vmatpush3.msra.mxu1 %v5318_v8  ;;  %v6057_v50 = vand.u32 4294901760, %v5456_v2 }
 0x328   :  { %4104 = vmatprep.subr.mxu0 %v4529_v0  ;;  %4147 = vmatprep.subr.mxu1 %v4529_v0 }
 0x329   :  { %4105 = vmatpush3.msra.mxu0 %v5323_v25  ;;  %4148 = vmatpush3.msra.mxu1 %v5326_v43 }
 0x32a   :  { %4106 = vmatprep.subr.mxu0 %v4529_v0  ;;  %4149 = vmatprep.subr.mxu1 %v4529_v0 }
 0x32b   :  { %4107 = vmatpush3.msra.mxu0 %v5331_v63  ;;  %4150 = vmatpush3.msra.mxu1 %v5328_v51  ;;  %v2492_v63 = vld [vmem:[#allocation5 + $0x260] sm:$0xff] }
 0x32c   :  { %4108 = vmatprep.subr.mxu0 %v4529_v0  ;;  %4151 = vmatprep.subr.mxu1 %v4529_v0 }
 0x32d   :  { %4109 = vmatpush3.msra.mxu0 %v5334_v47  ;;  %4152 = vmatpush3.msra.mxu1 %v5340_v20  ;;  %v2491_v47 = vld [vmem:[#allocation5 + $0x258] sm:$0xff] }
 0x32e   :  { %4110 = vmatprep.subr.mxu0 %v4529_v0  ;;  %4153 = vmatprep.subr.mxu1 %v4529_v0 }
 0x32f   :  { %4111 = vmatpush3.msra.mxu0 %v5337_v5  ;;  %4154 = vmatpush3.msra.mxu1 %v5395_v62 }
 0x330   :  { %4112 = vmatprep.subr.mxu0 %v4529_v0  ;;  %4155 = vmatprep.subr.mxu1 %v4529_v0 }
 0x331   :  { %4113 = vmatpush3.msra.mxu0 %v5347_v54  ;;  %4156 = vmatpush3.msra.mxu1 %v5403_v13  ;;  %v2490_v54 = vld [vmem:[#allocation5 + $0x250] sm:$0xff] }
 0x332   :  { %4114 = vmatprep.subr.mxu0 %v4529_v0  ;;  %4157 = vmatprep.subr.mxu1 %v4529_v0 }
 0x333   :  { %4115 = vmatpush3.msra.mxu0 %v5351_v35  ;;  %4158 = vmatpush3.msra.mxu1 %v5412_v45  ;;  %v2489_v35 = vld [vmem:[#allocation5 + $0x248] sm:$0xff] }
 0x334   :  { %4116 = vmatprep.subr.mxu0 %v4529_v0  ;;  %4159 = vmatprep.subr.mxu1 %v4529_v0 }
 0x335   :  { %4117 = vmatpush3.msra.mxu0 %v5363_v7  ;;  %4160 = vmatpush3.msra.mxu1 %v5424_v32  ;;  %v5687_v7 = vand.u32 4294901760, %v2489_v35 }
 0x336   :  { %4118 = vmatprep.subr.mxu0 %v4529_v0  ;;  %4161 = vmatprep.subr.mxu1 %v4529_v0 }
 0x337   :  { %4119 = vmatpush3.msra.mxu0 %v5401_v9  ;;  %4162 = vmatpush3.msra.mxu1 %v5438_v3 }
 0x338   :  { %4120 = vmatprep.subr.mxu0 %v4529_v0  ;;  %4163 = vmatprep.subr.mxu1 %v4529_v0 }
 0x339   :  { %4121 = vmatpush3.msra.mxu0 %v5410_v46  ;;  %4164 = vmatpush3.msra.mxu1 %v5445_v33 }
 0x33a   :  { %4122 = vmatprep.subr.mxu0 %v4529_v0  ;;  %4165 = vmatprep.subr.mxu1 %v4529_v0 }
 0x33b   :  { %4123 = vmatpush3.msra.mxu0 %v5422_v31  ;;  %4166 = vmatpush3.msra.mxu1 %v5458_v57 }
 0x33c   :  { %4124 = vmatprep.subr.mxu0 %v4529_v0  ;;  %4167 = vmatprep.subr.mxu1 %v4529_v0 }
 0x33d   :  { %4125 = vmatpush3.msra.mxu0 %v5434_v1  ;;  %4168 = vmatpush3.msra.mxu1 %v5468_v44 }
 0x33e   :  { %4126 = vmatprep.subr.mxu0 %v4529_v0  ;;  %4170 = vmatmul.mubr.f32.vlgmr.msra.gmra.mxu1 %v1920_v14  ;;  %v5771_v14 = vand.u32 4294901760, %v2485_v49 }
 0x33f   :  { %4207 = vmatprep.subr.mxu1 %v4529_v0  ;;  %4127 = vmatpush3.msra.mxu0 %v5449_v36 }
 0x340   :  { %4208 = vmatpush3.msra.mxu1 %v5306_v41  ;;  %4128 = vmatprep.subr.mxu0 %v4529_v0  ;;  %v6056_v41 = vand.u32 4294901760, %v5449_v36 }
 0x341   :  { %4209 = vmatprep.subr.mxu1 %v4529_v0  ;;  %4129 = vmatpush3.msra.mxu0 %v5456_v2 }
 0x342   :  { %4210 = vmatpush3.msra.mxu1 %v5311_v53  ;;  %4130 = vmatprep.subr.mxu0 %v4529_v0  ;;  %v6058_v53 = vand.u32 4294901760, %v5466_v59 }
 0x343   :  { %4211 = vmatprep.subr.mxu1 %v4529_v0  ;;  %4131 = vmatpush3.msra.mxu0 %v5466_v59 }
 0x344   :  { %4212 = vmatpush3.msra.mxu1 %v5314_v4  ;;  %4132 = vmatprep.subr.mxu0 %v4529_v0  ;;  %v6059_v4 = vand.u32 4294901760, %v5481_v29 }
 0x345   :  { %4213 = vmatprep.subr.mxu1 %v4529_v0  ;;  %4133 = vmatpush3.msra.mxu0 %v5481_v29 }
 0x346   :  { %4134 = vmatprep.mubr.msk.f32.mxu0 %vm4530_vm0, %v4529_v0  ;;  %4214 = vmatpush3.msra.mxu1 %v5316_v6  ;;  %v2495_v6 = vld [vmem:[#allocation5 + $0x278] sm:$0xff] }
 0x347   :  { %4135 = vmatmul.mubr.f32.vlgmr.msra.gmra.mxu0 %v5501_v15  ;;  %4172 = vmatprep.subr.mxu0 %v4529_v0  ;;  %v5769_v15 = vsub.f32 %v2486_v10, %v5762_v11 }
 0x348   :  { %4215 = vmatprep.subr.mxu1 %v4529_v0  ;;  %4173 = vmatpush3.msra.mxu0 %v1931_v21  ;;  %v2494_v21 = vld [vmem:[#allocation5 + $0x270] sm:$0xff] }
 0x349   :  { %4216 = vmatpush3.msra.mxu1 %v5318_v8  ;;  %4174 = vmatprep.subr.mxu0 %v4529_v0  ;;  %v5665_v8 = vand.u32 4294901760, %v2495_v6 }
 0x34a   :  { %4217 = vmatprep.subr.mxu1 %v4529_v0  ;;  %4175 = vmatpush3.msra.mxu0 %v1938_v16  ;;  %v5677_v16 = vand.u32 4294901760, %v2491_v47 }
 0x34b   :  { %4218 = vmatpush3.msra.mxu1 %v5326_v43  ;;  %4176 = vmatprep.subr.mxu0 %v4529_v0  ;;  %v5668_v25 = vsub.f32 %v2495_v6, %v5665_v8  ;;  %v5670_v43 = vand.u32 4294901760, %v2494_v21  ;;  %v2648_v6 = vand.u32 4294901760, %v2647_v30 }
 0x34c   :  { %4219 = vmatprep.subr.mxu1 %v4529_v0  ;;  %4177 = vmatpush3.msra.mxu0 %v1945_v17  ;;  %v2488_v17 = vld [vmem:[#allocation5 + $0x240] sm:$0xff] }
 0x34d   :  { %4220 = vmatpush3.msra.mxu1 %v5328_v51  ;;  %4178 = vmatprep.subr.mxu0 %v4529_v0  ;;  %v2493_v51 = vld [vmem:[#allocation5 + $0x268] sm:$0xff]  ;;  %v5699_v9 = vand.u32 4294901760, %v2488_v17 }
 0x34e   :  { %4221 = vmatprep.subr.mxu1 %v4529_v0  ;;  %4179 = vmatpush3.msra.mxu0 %v1952_v18  ;;  %v5673_v5 = vand.u32 4294901760, %v2493_v51  ;;  %v2590_v18 = vand.u32 4294901760, %v5668_v25 }
 0x34f   :  { %4222 = vmatpush3.msra.mxu1 %v5340_v20  ;;  %4180 = vmatprep.subr.mxu0 %v4529_v0  ;;  %v5675_v20 = vand.u32 4294901760, %v2492_v63 }
 0x350   :  { %4223 = vmatprep.subr.mxu1 %v4529_v0  ;;  %4181 = vmatpush3.msra.mxu0 %v1959_v22  ;;  %v5682_v22 = vsub.f32 %v2494_v21, %v5670_v43 }
 0x351   :  { %4224 = vmatpush3.msra.mxu1 %v5395_v62  ;;  %4182 = vmatprep.subr.mxu0 %v4529_v0  ;;  %v5696_v62 = vsub.f32 %v2491_v47, %v5677_v16 }
 0x352   :  { %4225 = vmatprep.subr.mxu1 %v4529_v0  ;;  %4183 = vmatpush3.msra.mxu0 %v1966_v37  ;;  %v5685_v37 = vand.u32 4294901760, %v2490_v54 }
 0x353   :  { %4226 = vmatpush3.msra.mxu1 %v5403_v13  ;;  %4184 = vmatprep.subr.mxu0 %v4529_v0  ;;  %v2591_v13 = vsub.f32 %v5668_v25, %v2590_v18 }
 0x354   :  { %4227 = vmatprep.subr.mxu1 %v4529_v0  ;;  %4185 = vmatpush3.msra.mxu0 %v1973_v34  ;;  %v5690_v34 = vsub.f32 %v2493_v51, %v5673_v5  ;;  %v5706_v46 = vsub.f32 %v2490_v54, %v5685_v37  ;;  %v2482_v54 = vld [vmem:[#allocation5 + $0x210] sm:$0xff] }
 0x355   :  { %4228 = vmatpush3.msra.mxu1 %v5412_v45  ;;  %4186 = vmatprep.subr.mxu0 %v4529_v0  ;;  %v5710_v45 = vsub.f32 %v2489_v35, %v5687_v7 }
 0x356   :  { %4229 = vmatprep.subr.mxu1 %v4529_v0  ;;  %4187 = vmatpush3.msra.mxu0 %v1980_v23  ;;  %v5693_v23 = vsub.f32 %v2492_v63, %v5675_v20 }
 0x357   :  { %4230 = vmatpush3.msra.mxu1 %v5424_v32  ;;  %4188 = vmatprep.subr.mxu0 %v4529_v0  ;;  %v2618_v32 = vand.u32 4294901760, %v5696_v62 }
 0x358   :  { %4231 = vmatprep.subr.mxu1 %v4529_v0  ;;  %4189 = vmatpush3.msra.mxu0 %v1987_v42  ;;  %v2597_v42 = vand.u32 4294901760, %v5682_v22  ;;  %v2611_v31 = vand.u32 4294901760, %v5693_v23 }
 0x359   :  { %4232 = vmatpush3.msra.mxu1 %v5438_v3  ;;  %4190 = vmatprep.subr.mxu0 %v4529_v0  ;;  %v2625_v3 = vand.u32 4294901760, %v5706_v46 }
 0x35a   :  { %4233 = vmatprep.subr.mxu1 %v4529_v0  ;;  %4191 = vmatpush3.msra.mxu0 %v1994_v28  ;;  %v2604_v28 = vand.u32 4294901760, %v5690_v34  ;;  %v2598_v1 = vsub.f32 %v5682_v22, %v2597_v42  ;;  %v2612_v36 = vsub.f32 %v5693_v23, %v2611_v31 }
 0x35b   :  { %4234 = vmatpush3.msra.mxu1 %v5445_v33  ;;  %4192 = vmatprep.subr.mxu0 %v4529_v0  ;;  %v2626_v29 = vsub.f32 %v5706_v46, %v2625_v3 }
 0x35c   :  { %4235 = vmatprep.subr.mxu1 %v4529_v0  ;;  %4193 = vmatpush3.msra.mxu0 %v2001_v56  ;;  %v2592_v56 = vand.u32 4294901760, %v2591_v13  ;;  %v2605_v33 = vsub.f32 %v5690_v34, %v2604_v28  ;;  %v2599_v2 = vand.u32 4294901760, %v2598_v1 }
 0x35d   :  { %4236 = vmatpush3.msra.mxu1 %v5458_v57  ;;  %4194 = vmatprep.subr.mxu0 %v4529_v0  ;;  %v2619_v57 = vsub.f32 %v5696_v62, %v2618_v32  ;;  %v2627_v27 = vand.u32 4294901760, %v2626_v29  ;;  %v2480_v29 = vld [vmem:[#allocation5 + $0x200] sm:$0xff] }
 0x35e   :  { %4237 = vmatprep.subr.mxu1 %v4529_v0  ;;  %4195 = vmatpush3.msra.mxu0 %v2008_v19  ;;  %v5722_v19 = vsub.f32 %v2488_v17, %v5699_v9  ;;  %v2606_v59 = vand.u32 4294901760, %v2605_v33  ;;  %v2481_v33 = vld [vmem:[#allocation5 + $0x208] sm:$0xff] }
 0x35f   :  { %4238 = vmatpush3.msra.mxu1 %v5468_v44  ;;  %4239 = vmatprep.mubr.msk.f32.mxu1 %vm4530_vm0, %v4529_v0  ;;  %v2613_v44 = vand.u32 4294901760, %v2612_v36  ;;  %v2620_v26 = vand.u32 4294901760, %v2619_v57 }
 0x360   :  { %4196 = vmatprep.subr.mxu0 %v4529_v0  ;;  %4240 = vmatmul.mubr.f32.vlgmr.msra.gmra.mxu1 %v5498_v61  ;;  %v2639_v38 = vand.u32 4294901760, %v5722_v19 }
 0x361   :  { %4197 = vmatpush3.msra.mxu0 %v6056_v41  ;;  %4204 = vmatprep.mubr.msk.f32.mxu0 %vm4530_vm0, %v4529_v0  ;;  %v2653_v41 = vand.u32 4294901760, %v5769_v15 }
 0x362   :  { %4198 = vmatprep.subr.mxu0 %v4529_v0  ;;  %4277 = vmatprep.subr.mxu1 %v4529_v0  ;;  %v2640_v52 = vsub.f32 %v5722_v19, %v2639_v38 }
 0x363   :  { %4199 = vmatpush3.msra.mxu0 %v6057_v50  ;;  %4309 = vmatprep.mubr.msk.f32.mxu1 %vm4530_vm0, %v4529_v0  ;;  %v5781_v50 = vsub.f32 %v2485_v49, %v5771_v14  ;;  %v2654_v21 = vsub.f32 %v5769_v15, %v2653_v41 }
 0x364   :  { %4200 = vmatprep.subr.mxu0 %v4529_v0  ;;  %4278 = vmatpush3.msra.mxu1 %v2592_v56  ;;  %v2641_v40 = vand.u32 4294901760, %v2640_v52  ;;  %v5804_v56 = vand.u32 4294901760, %v2482_v54 }
 0x365   :  { %4201 = vmatpush3.msra.mxu0 %v6058_v53  ;;  %4279 = vmatprep.subr.mxu1 %v4529_v0  ;;  %v5783_v53 = vand.u32 4294901760, %v2484_v58  ;;  %v2660_v51 = vand.u32 4294901760, %v5781_v50  ;;  %v2655_v35 = vand.u32 4294901760, %v2654_v21 }
 0x366   :  { %4202 = vmatprep.subr.mxu0 %v4529_v0  ;;  %4280 = vmatpush3.msra.mxu1 %v2599_v2  ;;  %v5815_v57 = vsub.f32 %v2482_v54, %v5804_v56 }
 0x367   :  { %4203 = vmatpush3.msra.mxu0 %v6059_v4  ;;  %4281 = vmatprep.subr.mxu1 %v4529_v0  ;;  %v2483_v4 = vld [vmem:[#allocation5 + $0x218] sm:$0xff]  ;;  %v5793_v63 = vsub.f32 %v2484_v58, %v5783_v53  ;;  %v2661_v17 = vsub.f32 %v5781_v50, %v2660_v51 }
 0x368   :  { %4205 = vmatmul.mubr.f32.vlgmr.msra.gmra.mxu0 %v5498_v61  ;;  %4242 = vmatprep.subr.mxu0 %v4529_v0  ;;  %v2632_v61 = vand.u32 4294901760, %v5710_v45  ;;  %v5797_v47 = vand.u32 4294901760, %v2483_v4 }
 0x369   :  { %4274 = vmatprep.mubr.msk.f32.mxu0 %vm4530_vm0, %v4529_v0  ;;  %4243 = vmatpush3.msra.mxu0 %v5665_v8  ;;  %v2667_v13 = vand.u32 4294901760, %v5793_v63  ;;  %v2662_v36 = vand.u32 4294901760, %v2661_v17 }
 0x36a   :  { %4244 = vmatprep.subr.mxu0 %v4529_v0  ;;  %4282 = vmatpush3.msra.mxu1 %v2606_v59  ;;  %v2633_v39 = vsub.f32 %v5710_v45, %v2632_v61  ;;  %v5808_v1 = vsub.f32 %v2483_v4, %v5797_v47  ;;  %v5817_v59 = vand.u32 4294901760, %v2481_v33 }
 0x36b   :  { %4245 = vmatpush3.msra.mxu0 %v5670_v43  ;;  %4283 = vmatprep.subr.mxu1 %v4529_v0  ;;  %v2668_v2 = vsub.f32 %v5793_v63, %v2667_v13 }
 0x36c   :  { %4246 = vmatprep.subr.mxu0 %v4529_v0  ;;  %4284 = vmatpush3.msra.mxu1 %v2613_v44  ;;  %v2634_v24 = vand.u32 4294901760, %v2633_v39  ;;  %v6045_v44 = vand.u32 4294901760, %v5808_v1  ;;  %v6044_v39 = vand.u32 4294901760, %v5815_v57  ;;  %v5825_v60 = vsub.f32 %v2481_v33, %v5817_v59 }
 0x36d   :  { %4247 = vmatpush3.msra.mxu0 %v5673_v5  ;;  %4285 = vmatprep.subr.mxu1 %v4529_v0 }
 0x36e   :  { %4248 = vmatprep.subr.mxu0 %v4529_v0  ;;  %4286 = vmatpush3.msra.mxu1 %v2620_v26  ;;  %v2669_v26 = vand.u32 4294901760, %v2668_v2  ;;  %v2675_v52 = vsub.f32 %v5808_v1, %v6045_v44  ;;  %v2682_v10 = vsub.f32 %v5815_v57, %v6044_v39 }
 0x36f   :  { %4249 = vmatpush3.msra.mxu0 %v5675_v20  ;;  %4287 = vmatprep.subr.mxu1 %v4529_v0 }
 0x370   :  { %4250 = vmatprep.subr.mxu0 %v4529_v0  ;;  %4288 = vmatpush3.msra.mxu1 %v2627_v27  ;;  %v5827_v27 = vand.u32 4294901760, %v2480_v29  ;;  %v2683_v58 = vand.u32 4294901760, %v2682_v10 }
 0x371   :  { %4251 = vmatpush3.msra.mxu0 %v5677_v16  ;;  %4289 = vmatprep.subr.mxu1 %v4529_v0 }
 0x372   :  { %4252 = vmatprep.subr.mxu0 %v4529_v0  ;;  %4290 = vmatpush3.msra.mxu1 %v2634_v24  ;;  %v6043_v24 = vand.u32 4294901760, %v5825_v60  ;;  %v5840_v49 = vsub.f32 %v2480_v29, %v5827_v27 }
 0x373   :  { %4253 = vmatpush3.msra.mxu0 %v5685_v37  ;;  %4291 = vmatprep.subr.mxu1 %v4529_v0 }
 0x374   :  { %4254 = vmatprep.subr.mxu0 %v4529_v0  ;;  %4292 = vmatpush3.msra.mxu1 %v2641_v40  ;;  %v2676_v40 = vand.u32 4294901760, %v2675_v52  ;;  %v2689_v30 = vsub.f32 %v5825_v60, %v6043_v24  ;;  %v6042_v4 = vand.u32 4294901760, %v5840_v49 }
 0x375   :  { %4255 = vmatpush3.msra.mxu0 %v5687_v7  ;;  %4293 = vmatprep.subr.mxu1 %v4529_v0 }
 0x376   :  { %4256 = vmatprep.subr.mxu0 %v4529_v0  ;;  %4294 = vmatpush3.msra.mxu1 %v2648_v6  ;;  %v2690_v6 = vand.u32 4294901760, %v2689_v30  ;;  %v2696_v21 = vsub.f32 %v5840_v49, %v6042_v4 }
 0x377   :  { %4257 = vmatpush3.msra.mxu0 %v5699_v9  ;;  %4295 = vmatprep.subr.mxu1 %v4529_v0 }
 0x378   :  { %4258 = vmatprep.subr.mxu0 %v4529_v0  ;;  %4296 = vmatpush3.msra.mxu1 %v2655_v35  ;;  %v2697_v54 = vand.u32 4294901760, %v2696_v21 }
 0x379   :  { %4259 = vmatpush3.msra.mxu0 %v5754_v48  ;;  %4297 = vmatprep.subr.mxu1 %v4529_v0 }
 0x37a   :  { %4260 = vmatprep.subr.mxu0 %v4529_v0  ;;  %4298 = vmatpush3.msra.mxu1 %v2662_v36 }
 0x37b   :  { %4261 = vmatpush3.msra.mxu0 %v5762_v11  ;;  %4299 = vmatprep.subr.mxu1 %v4529_v0 }
 0x37c   :  { %4262 = vmatprep.subr.mxu0 %v4529_v0  ;;  %4300 = vmatpush3.msra.mxu1 %v2669_v26 }
 0x37d   :  { %4263 = vmatpush3.msra.mxu0 %v5771_v14  ;;  %4301 = vmatprep.subr.mxu1 %v4529_v0 }
 0x37e   :  { %4264 = vmatprep.subr.mxu0 %v4529_v0  ;;  %4302 = vmatpush3.msra.mxu1 %v2676_v40 }
 0x37f   :  { %4265 = vmatpush3.msra.mxu0 %v5783_v53  ;;  %4303 = vmatprep.subr.mxu1 %v4529_v0 }
 0x380   :  { %4266 = vmatprep.subr.mxu0 %v4529_v0  ;;  %4304 = vmatpush3.msra.mxu1 %v2683_v58 }
 0x381   :  { %4267 = vmatpush3.msra.mxu0 %v5797_v47  ;;  %4305 = vmatprep.subr.mxu1 %v4529_v0 }
 0x382   :  { %4268 = vmatprep.subr.mxu0 %v4529_v0  ;;  %4306 = vmatpush3.msra.mxu1 %v2690_v6 }
 0x383   :  { %4269 = vmatpush3.msra.mxu0 %v5804_v56  ;;  %4307 = vmatprep.subr.mxu1 %v4529_v0 }
 0x384   :  { %4270 = vmatprep.subr.mxu0 %v4529_v0  ;;  %4308 = vmatpush3.msra.mxu1 %v2697_v54 }
 0x385   :  { %4271 = vmatpush3.msra.mxu0 %v5817_v59  ;;  %4347 = vmatprep.subr.mxu1 %v4529_v0 }
 0x386   :  { %4272 = vmatprep.subr.mxu0 %v4529_v0 }
 0x387   :  { %4273 = vmatpush3.msra.mxu0 %v5827_v27 }
 0x388   :  { %4312 = vmatprep.subr.mxu0 %v4529_v0 }
 0x3de   :  { %v2075_v35 = vpop.f32.mrf.mxu1 }
 0x3e0   :  { %v4101_v17 = vpop.f32.mrf.mxu1 }
 0x3e6   :  { %v1924_v33 = vpop.f32.mrf.mxu0 }
 0x3e7   :  { %v2076_v40 = vadd.f32 %v2075_v35, %v1924_v33 }
 0x3e8   :  { %v4066_v36 = vpop.f32.mrf.mxu0 }
 0x3fe   :  { %v2268_v2 = vpop.f32.mrf.mxu1 }
 0x400   :  { %v4171_v29 = vpop.f32.mrf.mxu1 }
 0x407   :  { %v2179_v26 = vpop.f32.mrf.mxu0 }
 0x408   :  { %v2180_v30 = vadd.f32 %v2179_v26, %v2076_v40 }
 0x409   :  { %v4136_v52 = vpop.f32.mrf.mxu0 }
 0x40a   :  { %v2269_v4 = vadd.f32 %v2268_v2, %v2180_v30 }
 0x420   :  { %v2474_v10 = vpop.f32.mrf.mxu1 }
 0x422   :  { %v4241_v58 = vpop.f32.mrf.mxu1 }
 0x428   :  { %v2387_v21 = vpop.f32.mrf.mxu0 }
 0x429   :  { %v2388_v6 = vadd.f32 %v2387_v21, %v2269_v4 }
 0x42a   :  { %v4206_v24 = vpop.f32.mrf.mxu0 }
 0x42b   :  { %v2475_v39 = vadd.f32 %v2474_v10, %v2388_v6 }
 0x42d   :  { %v2478_v54 = vmax.f32 %v2475_v39, 0.0 }
 0x42f   :  { %v5857_v44 = vand.u32 4294901760, %v2478_v54  ;;  %3138 = vst.msk [vmem:[#allocation7] sm:$0xff] %vm3137_vm3, %v2478_v54 }
 0x431   :  { %v5860_v17 = vsub.f32 %v2478_v54, %v5857_v44  ;;  %4310 = vmatmul.mubr.f32.vlgmr.msra.gmra.mxu1 %v5857_v44 }
 0x432   :  { %4348 = vmatpush3.msra.mxu1 %v5665_v8  ;;  %4379 = vmatprep.mubr.msk.f32.mxu1 %vm4530_vm0, %v4529_v0 }
 0x433   :  { %4349 = vmatprep.subr.mxu1 %v4529_v0  ;;  %v2579_v24 = vand.u32 4294901760, %v5860_v17 }
 0x434   :  { %4350 = vmatpush3.msra.mxu1 %v5670_v43 }
 0x435   :  { %4351 = vmatprep.subr.mxu1 %v4529_v0  ;;  %v2580_v39 = vsub.f32 %v5860_v17, %v2579_v24 }
 0x436   :  { %4352 = vmatpush3.msra.mxu1 %v5673_v5 }
 0x437   :  { %4353 = vmatprep.subr.mxu1 %v4529_v0  ;;  %v2581_v4 = vand.u32 4294901760, %v2580_v39 }
 0x438   :  { %4354 = vmatpush3.msra.mxu1 %v5675_v20 }
 0x439   :  { %4355 = vmatprep.subr.mxu1 %v4529_v0  ;;  %4275 = vmatmul.mubr.f32.vlgmr.msra.gmra.mxu0 %v2581_v4 }
 0x43a   :  { %4313 = vmatpush3.msra.mxu0 %v5668_v25  ;;  %4356 = vmatpush3.msra.mxu1 %v5677_v16  ;;  %v6061_v25 = vand.u32 4294901760, %v5815_v57 }
 0x43b   :  { %4314 = vmatprep.subr.mxu0 %v4529_v0  ;;  %4357 = vmatprep.subr.mxu1 %v4529_v0 }
 0x43c   :  { %4315 = vmatpush3.msra.mxu0 %v5682_v22  ;;  %4358 = vmatpush3.msra.mxu1 %v5685_v37 }
 0x43d   :  { %4316 = vmatprep.subr.mxu0 %v4529_v0  ;;  %4359 = vmatprep.subr.mxu1 %v4529_v0 }
 0x43e   :  { %4317 = vmatpush3.msra.mxu0 %v5690_v34  ;;  %4360 = vmatpush3.msra.mxu1 %v5687_v7 }
 0x43f   :  { %4318 = vmatprep.subr.mxu0 %v4529_v0  ;;  %4361 = vmatprep.subr.mxu1 %v4529_v0 }
 0x440   :  { %4319 = vmatpush3.msra.mxu0 %v5693_v23  ;;  %4362 = vmatpush3.msra.mxu1 %v5699_v9 }
 0x441   :  { %4320 = vmatprep.subr.mxu0 %v4529_v0  ;;  %4363 = vmatprep.subr.mxu1 %v4529_v0 }
 0x442   :  { %4321 = vmatpush3.msra.mxu0 %v5696_v62  ;;  %4364 = vmatpush3.msra.mxu1 %v5754_v48 }
 0x443   :  { %4322 = vmatprep.subr.mxu0 %v4529_v0  ;;  %4365 = vmatprep.subr.mxu1 %v4529_v0 }
 0x444   :  { %4323 = vmatpush3.msra.mxu0 %v5706_v46  ;;  %4366 = vmatpush3.msra.mxu1 %v5762_v11 }
 0x445   :  { %4324 = vmatprep.subr.mxu0 %v4529_v0  ;;  %4367 = vmatprep.subr.mxu1 %v4529_v0 }
 0x446   :  { %4325 = vmatpush3.msra.mxu0 %v5710_v45  ;;  %4368 = vmatpush3.msra.mxu1 %v5771_v14 }
 0x447   :  { %4326 = vmatprep.subr.mxu0 %v4529_v0  ;;  %4369 = vmatprep.subr.mxu1 %v4529_v0 }
 0x448   :  { %4327 = vmatpush3.msra.mxu0 %v5722_v19  ;;  %4370 = vmatpush3.msra.mxu1 %v5783_v53 }
 0x449   :  { %4328 = vmatprep.subr.mxu0 %v4529_v0  ;;  %4371 = vmatprep.subr.mxu1 %v4529_v0 }
 0x44a   :  { %4329 = vmatpush3.msra.mxu0 %v5760_v55  ;;  %4372 = vmatpush3.msra.mxu1 %v5797_v47 }
 0x44b   :  { %4330 = vmatprep.subr.mxu0 %v4529_v0  ;;  %4373 = vmatprep.subr.mxu1 %v4529_v0 }
 0x44c   :  { %4331 = vmatpush3.msra.mxu0 %v5769_v15  ;;  %4374 = vmatpush3.msra.mxu1 %v5804_v56 }
 0x44d   :  { %4332 = vmatprep.subr.mxu0 %v4529_v0  ;;  %4375 = vmatprep.subr.mxu1 %v4529_v0 }
 0x44e   :  { %4333 = vmatpush3.msra.mxu0 %v5781_v50  ;;  %4376 = vmatpush3.msra.mxu1 %v5817_v59 }
 0x44f   :  { %4334 = vmatprep.subr.mxu0 %v4529_v0  ;;  %4377 = vmatprep.subr.mxu1 %v4529_v0 }
 0x450   :  { %4335 = vmatpush3.msra.mxu0 %v5793_v63  ;;  %4378 = vmatpush3.msra.mxu1 %v5827_v27 }
 0x451   :  { %4336 = vmatprep.subr.mxu0 %v4529_v0  ;;  %4380 = vmatmul.mubr.f32.vlgmr.msra.gmra.mxu1 %v2579_v24 }
 0x452   :  { %4417 = vmatprep.subr.mxu1 %v4529_v0  ;;  %4337 = vmatpush3.msra.mxu0 %v5808_v1 }
 0x453   :  { %4418 = vmatpush3.msra.mxu1 %v5665_v8  ;;  %4338 = vmatprep.subr.mxu0 %v4529_v0  ;;  %v6060_v8 = vand.u32 4294901760, %v5808_v1 }
 0x454   :  { %4419 = vmatprep.subr.mxu1 %v4529_v0  ;;  %4339 = vmatpush3.msra.mxu0 %v5815_v57 }
 0x455   :  { %4420 = vmatpush3.msra.mxu1 %v5670_v43  ;;  %4340 = vmatprep.subr.mxu0 %v4529_v0  ;;  %v6062_v43 = vand.u32 4294901760, %v5825_v60 }
 0x456   :  { %4421 = vmatprep.subr.mxu1 %v4529_v0  ;;  %4341 = vmatpush3.msra.mxu0 %v5825_v60 }
 0x457   :  { %4422 = vmatpush3.msra.mxu1 %v5673_v5  ;;  %4342 = vmatprep.subr.mxu0 %v4529_v0  ;;  %v6063_v5 = vand.u32 4294901760, %v5840_v49 }
 0x458   :  { %4423 = vmatprep.subr.mxu1 %v4529_v0  ;;  %4343 = vmatpush3.msra.mxu0 %v5840_v49 }
 0x459   :  { %4344 = vmatprep.mubr.msk.f32.mxu0 %vm4530_vm0, %v4529_v0  ;;  %4424 = vmatpush3.msra.mxu1 %v5675_v20 }
 0x45a   :  { %4345 = vmatmul.mubr.f32.vlgmr.msra.gmra.mxu0 %v5860_v17  ;;  %4382 = vmatprep.subr.mxu0 %v4529_v0 }
 0x45b   :  { %4425 = vmatprep.subr.mxu1 %v4529_v0  ;;  %4383 = vmatpush3.msra.mxu0 %v2590_v18 }
 0x45c   :  { %4426 = vmatpush3.msra.mxu1 %v5677_v16  ;;  %4384 = vmatprep.subr.mxu0 %v4529_v0 }
 0x45d   :  { %4427 = vmatprep.subr.mxu1 %v4529_v0  ;;  %4385 = vmatpush3.msra.mxu0 %v2597_v42 }
 0x45e   :  { %4428 = vmatpush3.msra.mxu1 %v5685_v37  ;;  %4386 = vmatprep.subr.mxu0 %v4529_v0 }
 0x45f   :  { %4429 = vmatprep.subr.mxu1 %v4529_v0  ;;  %4387 = vmatpush3.msra.mxu0 %v2604_v28 }
 0x460   :  { %4430 = vmatpush3.msra.mxu1 %v5687_v7  ;;  %4388 = vmatprep.subr.mxu0 %v4529_v0 }
 0x461   :  { %4431 = vmatprep.subr.mxu1 %v4529_v0  ;;  %4389 = vmatpush3.msra.mxu0 %v2611_v31 }
 0x462   :  { %4432 = vmatpush3.msra.mxu1 %v5699_v9  ;;  %4390 = vmatprep.subr.mxu0 %v4529_v0 }
 0x463   :  { %4433 = vmatprep.subr.mxu1 %v4529_v0  ;;  %4391 = vmatpush3.msra.mxu0 %v2618_v32 }
 0x464   :  { %4434 = vmatpush3.msra.mxu1 %v5754_v48  ;;  %4392 = vmatprep.subr.mxu0 %v4529_v0 }
 0x465   :  { %4435 = vmatprep.subr.mxu1 %v4529_v0  ;;  %4393 = vmatpush3.msra.mxu0 %v2625_v3 }
 0x466   :  { %4436 = vmatpush3.msra.mxu1 %v5762_v11  ;;  %4394 = vmatprep.subr.mxu0 %v4529_v0 }
 0x467   :  { %4437 = vmatprep.subr.mxu1 %v4529_v0  ;;  %4395 = vmatpush3.msra.mxu0 %v2632_v61 }
 0x468   :  { %4438 = vmatpush3.msra.mxu1 %v5771_v14  ;;  %4396 = vmatprep.subr.mxu0 %v4529_v0 }
 0x469   :  { %4439 = vmatprep.subr.mxu1 %v4529_v0  ;;  %4397 = vmatpush3.msra.mxu0 %v2639_v38 }
 0x46a   :  { %4440 = vmatpush3.msra.mxu1 %v5783_v53  ;;  %4398 = vmatprep.subr.mxu0 %v4529_v0 }
 0x46b   :  { %4441 = vmatprep.subr.mxu1 %v4529_v0  ;;  %4399 = vmatpush3.msra.mxu0 %v2646_v12 }
 0x46c   :  { %4442 = vmatpush3.msra.mxu1 %v5797_v47  ;;  %4400 = vmatprep.subr.mxu0 %v4529_v0 }
 0x46d   :  { %4443 = vmatprep.subr.mxu1 %v4529_v0  ;;  %4401 = vmatpush3.msra.mxu0 %v2653_v41 }
 0x46e   :  { %4444 = vmatpush3.msra.mxu1 %v5804_v56  ;;  %4402 = vmatprep.subr.mxu0 %v4529_v0 }
 0x46f   :  { %4445 = vmatprep.subr.mxu1 %v4529_v0  ;;  %4403 = vmatpush3.msra.mxu0 %v2660_v51 }
 0x470   :  { %4446 = vmatpush3.msra.mxu1 %v5817_v59  ;;  %4404 = vmatprep.subr.mxu0 %v4529_v0 }
 0x471   :  { %4447 = vmatprep.subr.mxu1 %v4529_v0  ;;  %4405 = vmatpush3.msra.mxu0 %v2667_v13 }
 0x472   :  { %4448 = vmatpush3.msra.mxu1 %v5827_v27  ;;  %4449 = vmatprep.mubr.msk.f32.mxu1 %vm4530_vm0, %v4529_v0 }
 0x473   :  { %4406 = vmatprep.subr.mxu0 %v4529_v0  ;;  %4450 = vmatmul.mubr.f32.vlgmr.msra.gmra.mxu1 %v5857_v44 }
 0x474   :  { %4407 = vmatpush3.msra.mxu0 %v6060_v8  ;;  %4414 = vmatprep.mubr.msk.f32.mxu0 %vm4530_vm0, %v4529_v0 }
 0x475   :  { %4408 = vmatprep.subr.mxu0 %v4529_v0 }
 0x476   :  { %4409 = vmatpush3.msra.mxu0 %v6061_v25 }
 0x477   :  { %4410 = vmatprep.subr.mxu0 %v4529_v0 }
 0x478   :  { %4411 = vmatpush3.msra.mxu0 %v6062_v43 }
 0x479   :  { %4412 = vmatprep.subr.mxu0 %v4529_v0 }
 0x47a   :  { %4413 = vmatpush3.msra.mxu0 %v6063_v5 }
 0x47b   :  { %4415 = vmatmul.mubr.f32.vlgmr.msra.gmra.mxu0 %v5857_v44 }
 0x47c   :  { %4510 = shalt.err (!%p4507_p0)
}
 0x47d   :  { %3150 = dma.vmem_to_hbm [thread:$0]  %s3148_s1, 128, %s6026_s2, [#allocation4]   ;;  %vm3139_vm4 = vcmask 23552  }
 0x4f1   :  { %v2734_v0 = vpop.f32.mrf.mxu1 }
 0x4f3   :  { %v4311_v20 = vpop.f32.mrf.mxu1 }
 0x4f9   :  { %v2583_v16 = vpop.f32.mrf.mxu0 }
 0x4fa   :  { %v2735_v62 = vadd.f32 %v2734_v0, %v2583_v16 }
 0x4fb   :  { %v4276_v18 = vpop.f32.mrf.mxu0 }
 0x511   :  { %v2927_v22 = vpop.f32.mrf.mxu1 }
 0x513   :  { %v4381_v37 = vpop.f32.mrf.mxu1 }
 0x51a   :  { %v2838_v7 = vpop.f32.mrf.mxu0 }
 0x51b   :  { %v2839_v42 = vadd.f32 %v2838_v7, %v2735_v62 }
 0x51c   :  { %v4346_v34 = vpop.f32.mrf.mxu0 }
 0x51d   :  { %v2928_v46 = vadd.f32 %v2927_v22, %v2839_v42 }
 0x533   :  { %v3133_v23 = vpop.f32.mrf.mxu1 }
 0x535   :  { %v4451_v9 = vpop.f32.mrf.mxu1 }
 0x53b   :  { %v3046_v45 = vpop.f32.mrf.mxu0 }
 0x53c   :  { %v3047_v28 = vadd.f32 %v3046_v45, %v2928_v46 }
 0x53d   :  { %v4416_v31 = vpop.f32.mrf.mxu0 }
 0x53e   :  { %v3134_v32 = vadd.f32 %v3133_v23, %v3047_v28 }
 0x540   :  { %3140 = vst.msk [vmem:[%s6027_s3] sm:$0xff] %vm3139_vm4, %v3134_v32 }
 0x541   :  { %4523 = dma.done.wait [#allocation4], 128  }
 0x542   :  { %4524 = vsyncadd [#allocation4], 4294967168 }
 0x543   :  { %3158 = vsyncpa [#allocation3], 1 }
 0x544   :  { %3159 = vsyncpa [#allocation6], 1 }
 0x545   :  { %3160 = vsyncpa [#allocation4], 1 }

</bundles_post_ra>
